<compile_context>
chip_gen: v6e
topology: v6e:2x2x1
jax: 0.10.0
libtpu: 0.0.40
codegen_flags: <defaults>
</compile_context>

<pallas_src>
import functools

import jax
import jax.numpy as jnp
from jax.experimental import pallas as pl
from jax.experimental.pallas import tpu as pltpu

BN_EPS = 1e-5


# ------------------------------ small helpers ------------------------------

def _round_up(x, m):
    return ((x + m - 1) // m) * m


def _choose_tm(M, max_tm=512):
    """Row-tile size: large tiles amortize per-grid-step overhead; for small
    problems split into (at least) 2 grid steps so both v7x TensorCores get
    work. Always a multiple of 8 (sublane alignment)."""
    if M >= 2 * max_tm:
        return max_tm
    return max(8, _round_up((M + 1) // 2, 8))


# ------------------------------ Pallas kernels ------------------------------

def conv_mm_bn_relu_kernel(x_ref, w_ref, s_ref, t_ref, o_ref):
    # out = relu((x @ w) * scale + shift)  -- used for the first full conv
    # (via im2col, K = 9*cin is tiny so MXU shape doesn't matter here).
    acc = jnp.dot(x_ref[...], w_ref[...], preferred_element_type=jnp.float32)
    o_ref[...] = jnp.maximum(acc * s_ref[...] + t_ref[...], 0.0).astype(o_ref.dtype)


def dsconv_fused_kernel(p_ref, dww_ref, dws_ref, dwt_ref,
                        pww_ref, pws_ref, pwt_ref, o_ref):
    # Fused DSConv2d:
    #   p_ref   : (9, tm, C)  depthwise im2col patches, tap-major so each
    #             p_ref[k] is a lane-aligned (tm, C) view (no relayout).
    #   dww_ref : (9, 1, C)   depthwise taps.
    #   dws/dwt : (1, C)      folded BN scale/shift for the depthwise stage.
    #   pww_ref : (C, Cout)   pointwise weights.
    #   pws/pwt : (1, Cout)   folded BN scale/shift for the pointwise stage.
    #
    # Depthwise 3x3 MAC on the VPU (f32 math on all chips; v5e has no bf16
    # VALU), per-tap ref reads keep the live vreg set small.
    acc = p_ref[0].astype(jnp.float32) * dww_ref[0].astype(jnp.float32)
    for k in range(1, 9):
        acc = acc + p_ref[k].astype(jnp.float32) * dww_ref[k].astype(jnp.float32)
    y = jnp.maximum(acc * dws_ref[...] + dwt_ref[...], 0.0)
    # Pointwise 1x1 on the MXU in the same grid step -> the (tm, C)
    # intermediate never touches HBM.
    out = jnp.dot(y.astype(pww_ref.dtype), pww_ref[...],
                  preferred_element_type=jnp.float32)
    o_ref[...] = jnp.maximum(out * pws_ref[...] + pwt_ref[...], 0.0).astype(o_ref.dtype)


# ----------------------------- kernel wrappers ------------------------------

def _pad_rows(x, axis, tm):
    M = x.shape[axis]
    Mp = _round_up(M, tm)
    if Mp != M:
        pad = [(0, 0)] * x.ndim
        pad[axis] = (0, Mp - M)
        x = jnp.pad(x, pad)
    return x, M, Mp


def conv_mm_bn_relu(x, w, scale, shift, max_tm=512):
    M, K = x.shape
    Cout = w.shape[1]
    tm = _choose_tm(M, max_tm)
    xp, M, Mp = _pad_rows(x, 0, tm)
    out = pl.pallas_call(
        conv_mm_bn_relu_kernel,
        out_shape=jax.ShapeDtypeStruct((Mp, Cout), jnp.float32),
        grid=(Mp // tm,),
        in_specs=[
            pl.BlockSpec((tm, K), lambda i: (i, 0)),
            pl.BlockSpec((K, Cout), lambda i: (0, 0)),
            pl.BlockSpec((1, Cout), lambda i: (0, 0)),
            pl.BlockSpec((1, Cout), lambda i: (0, 0)),
        ],
        out_specs=pl.BlockSpec((tm, Cout), lambda i: (i, 0)),
        compiler_params=pltpu.CompilerParams(dimension_semantics=("parallel",)),
    )(xp, w, scale.reshape(1, Cout), shift.reshape(1, Cout))
    return out[:M]


def dsconv_fused(patches, dw_w, dw_scale, dw_shift, pw_w, pw_scale, pw_shift,
                 max_tm=512):
    # patches: (9, M, C) tap-major; dw_w: (9, 1, C); pw_w: (C, Cout)
    _, M, C = patches.shape
    Cout = pw_w.shape[1]
    tm = _choose_tm(M, max_tm)
    pp, M, Mp = _pad_rows(patches, 1, tm)
    out = pl.pallas_call(
        dsconv_fused_kernel,
        out_shape=jax.ShapeDtypeStruct((Mp, Cout), jnp.float32),
        grid=(Mp // tm,),
        in_specs=[
            pl.BlockSpec((9, tm, C), lambda i: (0, i, 0)),
            pl.BlockSpec((9, 1, C), lambda i: (0, 0, 0)),
            pl.BlockSpec((1, C), lambda i: (0, 0)),
            pl.BlockSpec((1, C), lambda i: (0, 0)),
            pl.BlockSpec((C, Cout), lambda i: (0, 0)),
            pl.BlockSpec((1, Cout), lambda i: (0, 0)),
            pl.BlockSpec((1, Cout), lambda i: (0, 0)),
        ],
        out_specs=pl.BlockSpec((tm, Cout), lambda i: (i, 0)),
        compiler_params=pltpu.CompilerParams(dimension_semantics=("parallel",)),
    )(pp, dw_w, dw_scale.reshape(1, C), dw_shift.reshape(1, C),
      pw_w, pw_scale.reshape(1, Cout), pw_shift.reshape(1, Cout))
    return out[:M]


# -------------------------------- glue (JAX) --------------------------------

def extract_patches_tap_major(x, ksize=3, stride=2, pad=1):
    """im2col: (N,H,W,C) -> (9, N*Ho*Wo, C), tap axis leading (kh major, kw
    minor) so channels stay dense on the lane axis inside the kernels."""
    N, H, W, C = x.shape
    xp = jnp.pad(x, ((0, 0), (pad, pad), (pad, pad), (0, 0)))
    Ho = (H + 2 * pad - ksize) // stride + 1
    Wo = (W + 2 * pad - ksize) // stride + 1
    taps = []
    for kh in range(ksize):
        for kw in range(ksize):
            taps.append(xp[:, kh:kh + stride * (Ho - 1) + 1:stride,
                           kw:kw + stride * (Wo - 1) + 1:stride, :])
    patches = jnp.stack(taps, axis=0)  # (9, N, Ho, Wo, C)
    return patches.reshape(ksize * ksize, N * Ho * Wo, C), (N, Ho, Wo)


def fold_bn(gamma, beta, mean, var, conv_bias=None):
    scale = gamma / jnp.sqrt(var + BN_EPS)
    shift = beta - mean * scale
    if conv_bias is not None:
        shift = shift + conv_bias * scale
    return scale, shift


@functools.partial(jax.jit, static_argnames=("compute_dtype",))
def learning_to_downsample(x_nchw, P, compute_dtype=jnp.float32):
    x = jnp.transpose(x_nchw, (0, 2, 3, 1)).astype(jnp.float32)  # NHWC
    cdt = jnp.dtype(compute_dtype)  # matmul-tile dtype (bf16 on v6e/v7x)

    # --- Conv2dBnReLU: 3x3 stride 2 pad 1, cin -> 32, conv bias folded in ---
    cin = x.shape[-1]
    taps, (N, Ho, Wo) = extract_patches_tap_major(x)
    cols = jnp.transpose(taps, (1, 0, 2)).reshape(N * Ho * Wo, 9 * cin)
    w0 = jnp.transpose(P["w0"], (2, 3, 1, 0)).reshape(9 * cin, -1)  # (kh,kw,cin)
    s0, t0 = fold_bn(P["bn0_g"], P["bn0_b"], P["bn0_m"], P["bn0_v"], P["b0"])
    y = conv_mm_bn_relu(cols.astype(cdt), w0.astype(cdt), s0, t0)
    x = y.reshape(N, Ho, Wo, -1)

    # --- DSConv2d x2, each as ONE fused Pallas kernel (DW+BN+ReLU -> PW+BN+ReLU)
    for i in (1, 2):
        C = x.shape[-1]
        taps, (N, Ho, Wo) = extract_patches_tap_major(x)
        # TODO(synk): read the NHWC feature map directly in-kernel with a
        # halo'd BlockSpec to avoid the ~2.25x im2col duplication in HBM.
        wdw = jnp.transpose(P[f"dw{i}_w"], (2, 3, 0, 1)).reshape(9, 1, C)
        sdw, tdw = fold_bn(P[f"dwbn{i}_g"], P[f"dwbn{i}_b"],
                           P[f"dwbn{i}_m"], P[f"dwbn{i}_v"])
        wpw = jnp.transpose(P[f"pw{i}_w"], (2, 3, 1, 0)).reshape(C, -1)  # (C,Cout)
        spw, tpw = fold_bn(P[f"pwbn{i}_g"], P[f"pwbn{i}_b"],
                           P[f"pwbn{i}_m"], P[f"pwbn{i}_v"])
        y = dsconv_fused(taps.astype(cdt), wdw, sdw, tdw,
                         wpw.astype(cdt), spw, tpw)
        x = y.reshape(N, Ho, Wo, -1)

    return jnp.transpose(x, (0, 3, 1, 2))  # back to NCHW


# ---------------------------- pure-JAX reference ----------------------------

def ref_forward(x_nchw, P):
    x = jnp.transpose(x_nchw, (0, 2, 3, 1)).astype(jnp.float32)

    def conv(x, w_oihw, stride, pad, groups=1):
        w = jnp.transpose(w_oihw, (2, 3, 1, 0))  # HWIO
        return jax.lax.conv_general_dilated(
            x, w, (stride, stride), ((pad, pad), (pad, pad)),
            dimension_numbers=("NHWC", "HWIO", "NHWC"),
            feature_group_count=groups)

    def bnrelu(x, g, b, m, v):
        return jnp.maximum((x - m) / jnp.sqrt(v + BN_EPS) * g + b, 0.0)

    x = conv(x, P["w0"], 2, 1) + P["b0"]
    x = bnrelu(x, P["bn0_g"], P["bn0_b"], P["bn0_m"], P["bn0_v"])
    for i in (1, 2):
        C = x.shape[-1]
        x = conv(x, P[f"dw{i}_w"], 2, 1, groups=C)
        x = bnrelu(x, P[f"dwbn{i}_g"], P[f"dwbn{i}_b"], P[f"dwbn{i}_m"], P[f"dwbn{i}_v"])
        x = conv(x, P[f"pw{i}_w"], 1, 0)
        x = bnrelu(x, P[f"pwbn{i}_g"], P[f"pwbn{i}_b"], P[f"pwbn{i}_m"], P[f"pwbn{i}_v"])
    return jnp.transpose(x, (0, 3, 1, 2))


# ----------------------------- deterministic init ---------------------------

def init_params(key, cin=3, c1=32, c2=48, c3=64):
    ks = iter(jax.random.split(key, 32))

    def nrm(shape, std=0.1):
        return std * jax.random.normal(next(ks), shape, jnp.float32)

    def uni(shape, lo=0.5, hi=1.5):
        return jax.random.uniform(next(ks), shape, jnp.float32, lo, hi)

    P = {}
    P["w0"] = nrm((c1, cin, 3, 3))
    P["b0"] = nrm((c1,))
    P["bn0_g"], P["bn0_b"] = uni((c1,)), nrm((c1,))
    P["bn0_m"], P["bn0_v"] = nrm((c1,)), uni((c1,))
    for i, ci, co in [(1, c1, c2), (2, c2, c3)]:
        P[f"dw{i}_w"] = nrm((ci, 1, 3, 3))
        P[f"dwbn{i}_g"], P[f"dwbn{i}_b"] = uni((ci,)), nrm((ci,))
        P[f"dwbn{i}_m"], P[f"dwbn{i}_v"] = nrm((ci,)), uni((ci,))
        P[f"pw{i}_w"] = nrm((co, ci, 1, 1))
        P[f"pwbn{i}_g"], P[f"pwbn{i}_b"] = uni((co,)), nrm((co,))
        P[f"pwbn{i}_m"], P[f"pwbn{i}_v"] = nrm((co,)), uni((co,))
    return P


if __name__ == "__main__":
    key = jax.random.PRNGKey(0)
    kx, kp = jax.random.split(key)
    x = jax.random.normal(kx, (2, 3, 32, 32), jnp.float32)  # NCHW, like PyTorch
    P = init_params(kp)

    ref = jax.block_until_ready(ref_forward(x, P))

    # f32 path: bit-for-bit-ish against the f32 XLA conv reference.
    out = jax.block_until_ready(learning_to_downsample(x, P))
    assert out.shape == (2, 64, 4, 4), out.shape
    assert jnp.allclose(out, ref, atol=1e-3, rtol=1e-3), \
        float(jnp.max(jnp.abs(out - ref)))

    # bf16 matmul tiles (v6e/v7x bandwidth win); looser tolerance vs f32 ref.
    out_bf16 = jax.block_until_ready(
        learning_to_downsample(x, P, compute_dtype=jnp.bfloat16))
    assert jnp.allclose(out_bf16, ref, atol=5e-2, rtol=5e-2), \
        float(jnp.max(jnp.abs(out_bf16 - ref)))

    print("KERNEL_OK")
</pallas_src>

<mosaic_0001>
module attributes {stable_mosaic.version = 11 : i64} {
  func.func @conv_mm_bn_relu_kernel(%arg0: i32, %arg1: memref<256x27xf32, #tpu.memory_space<vmem>>, %arg2: memref<27x32xf32, #tpu.memory_space<vmem>>, %arg3: memref<1x32xf32, #tpu.memory_space<vmem>>, %arg4: memref<1x32xf32, #tpu.memory_space<vmem>>, %arg5: memref<256x32xf32, #tpu.memory_space<vmem>>) attributes {dimension_semantics = [#tpu.dimension_semantics<parallel>], iteration_bounds = array<i64: 2>, scalar_prefetch = 0 : i64, scratch_operands = 0 : i64, tpu.core_type = #tpu.core_type<tc>, window_params = [{transform_indices = @transform_0, window_bounds = array<i64: 256, 27>}, {pipeline_mode = #tpu.pipeline_mode<synchronous>, transform_indices = @transform_1, window_bounds = array<i64: 27, 32>}, {pipeline_mode = #tpu.pipeline_mode<synchronous>, transform_indices = @transform_2, window_bounds = array<i64: 1, 32>}, {pipeline_mode = #tpu.pipeline_mode<synchronous>, transform_indices = @transform_3, window_bounds = array<i64: 1, 32>}, {transform_indices = @transform_4, window_bounds = array<i64: 256, 32>}]} {
    %c0 = arith.constant 0 : index
    %c0_0 = arith.constant 0 : index
    %0 = vector.load %arg1[%c0, %c0_0] : memref<256x27xf32, #tpu.memory_space<vmem>>, vector<256x27xf32>
    %c0_1 = arith.constant 0 : index
    %c0_2 = arith.constant 0 : index
    %1 = vector.load %arg2[%c0_1, %c0_2] : memref<27x32xf32, #tpu.memory_space<vmem>>, vector<27x32xf32>
    %cst = arith.constant dense<0.000000e+00> : vector<256x32xf32>
    %2 = tpu.matmul %0, %1, %cst {dimension_numbers = #tpu.dot_dimension_numbers<[1], [0], [0], [1], [0, 0, 1, 1], [], []>} : vector<256x27xf32>, vector<27x32xf32>, vector<256x32xf32> -> vector<256x32xf32>
    %c0_3 = arith.constant 0 : index
    %c0_4 = arith.constant 0 : index
    %3 = vector.load %arg3[%c0_3, %c0_4] : memref<1x32xf32, #tpu.memory_space<vmem>>, vector<1x32xf32>
    %4 = vector.broadcast %3 : vector<1x32xf32> to vector<256x32xf32>
    %5 = arith.mulf %2, %4 : vector<256x32xf32>
    %c0_5 = arith.constant 0 : index
    %c0_6 = arith.constant 0 : index
    %6 = vector.load %arg4[%c0_5, %c0_6] : memref<1x32xf32, #tpu.memory_space<vmem>>, vector<1x32xf32>
    %7 = vector.broadcast %6 : vector<1x32xf32> to vector<256x32xf32>
    %8 = arith.addf %5, %7 : vector<256x32xf32>
    %cst_7 = arith.constant 0.000000e+00 : f32
    %9 = vector.broadcast %cst_7 : f32 to vector<256x32xf32>
    %10 = arith.maximumf %8, %9 : vector<256x32xf32>
    %c0_8 = arith.constant 0 : index
    %c0_9 = arith.constant 0 : index
    %11 = vector.load %arg5[%c0_8, %c0_9] : memref<256x32xf32, #tpu.memory_space<vmem>>, vector<256x32xf32>
    tpu.vector_store %arg5[%c0_8, %c0_9], %10 {strides = array<i32>} : memref<256x32xf32, #tpu.memory_space<vmem>>, vector<256x32xf32>,
    return
  }
  func.func @transform_0(%arg0: i32) -> (i32, i32) {
    %c0_i32 = arith.constant 0 : i32
    %c0_i32_0 = arith.constant 0 : i32
    return %arg0, %c0_i32 : i32, i32
  }
  func.func @transform_1(%arg0: i32) -> (i32, i32) {
    %c0_i32 = arith.constant 0 : i32
    %c0_i32_0 = arith.constant 0 : i32
    %c0_i32_1 = arith.constant 0 : i32
    return %c0_i32, %c0_i32_0 : i32, i32
  }
  func.func @transform_2(%arg0: i32) -> (i32, i32) {
    %c0_i32 = arith.constant 0 : i32
    %c0_i32_0 = arith.constant 0 : i32
    %c0_i32_1 = arith.constant 0 : i32
    return %c0_i32, %c0_i32_0 : i32, i32
  }
  func.func @transform_3(%arg0: i32) -> (i32, i32) {
    %c0_i32 = arith.constant 0 : i32
    %c0_i32_0 = arith.constant 0 : i32
    %c0_i32_1 = arith.constant 0 : i32
    return %c0_i32, %c0_i32_0 : i32, i32
  }
  func.func @transform_4(%arg0: i32) -> (i32, i32) {
    %c0_i32 = arith.constant 0 : i32
    %c0_i32_0 = arith.constant 0 : i32
    return %arg0, %c0_i32 : i32, i32
  }
}

module attributes {stable_mosaic.version = 11 : i64} {
  func.func @dsconv_fused_kernel(%arg0: i32, %arg1: memref<9x64x32xf32, #tpu.memory_space<vmem>>, %arg2: memref<9x1x32xf32, #tpu.memory_space<vmem>>, %arg3: memref<1x32xf32, #tpu.memory_space<vmem>>, %arg4: memref<1x32xf32, #tpu.memory_space<vmem>>, %arg5: memref<32x48xf32, #tpu.memory_space<vmem>>, %arg6: memref<1x48xf32, #tpu.memory_space<vmem>>, %arg7: memref<1x48xf32, #tpu.memory_space<vmem>>, %arg8: memref<64x48xf32, #tpu.memory_space<vmem>>) attributes {dimension_semantics = [#tpu.dimension_semantics<parallel>], iteration_bounds = array<i64: 2>, scalar_prefetch = 0 : i64, scratch_operands = 0 : i64, tpu.core_type = #tpu.core_type<tc>, window_params = [{transform_indices = @transform_0, window_bounds = array<i64: 9, 64, 32>}, {pipeline_mode = #tpu.pipeline_mode<synchronous>, transform_indices = @transform_1, window_bounds = array<i64: 9, 1, 32>}, {pipeline_mode = #tpu.pipeline_mode<synchronous>, transform_indices = @transform_2, window_bounds = array<i64: 1, 32>}, {pipeline_mode = #tpu.pipeline_mode<synchronous>, transform_indices = @transform_3, window_bounds = array<i64: 1, 32>}, {pipeline_mode = #tpu.pipeline_mode<synchronous>, transform_indices = @transform_4, window_bounds = array<i64: 32, 48>}, {pipeline_mode = #tpu.pipeline_mode<synchronous>, transform_indices = @transform_5, window_bounds = array<i64: 1, 48>}, {pipeline_mode = #tpu.pipeline_mode<synchronous>, transform_indices = @transform_6, window_bounds = array<i64: 1, 48>}, {transform_indices = @transform_7, window_bounds = array<i64: 64, 48>}]} {
    %c0 = arith.constant 0 : index
    %c0_0 = arith.constant 0 : index
    %c0_1 = arith.constant 0 : index
    %0 = vector.load %arg1[%c0, %c0_0, %c0_1] : memref<9x64x32xf32, #tpu.memory_space<vmem>>, vector<1x64x32xf32>
    %1 = vector.shape_cast %0 : vector<1x64x32xf32> to vector<64x32xf32>
    %c0_2 = arith.constant 0 : index
    %c0_3 = arith.constant 0 : index
    %c0_4 = arith.constant 0 : index
    %2 = vector.load %arg2[%c0_2, %c0_3, %c0_4] : memref<9x1x32xf32, #tpu.memory_space<vmem>>, vector<1x1x32xf32>
    %3 = vector.shape_cast %2 : vector<1x1x32xf32> to vector<1x32xf32>
    %4 = vector.broadcast %3 : vector<1x32xf32> to vector<64x32xf32>
    %5 = arith.mulf %1, %4 : vector<64x32xf32>
    %c1 = arith.constant 1 : index
    %c0_5 = arith.constant 0 : index
    %c0_6 = arith.constant 0 : index
    %6 = vector.load %arg1[%c1, %c0_5, %c0_6] : memref<9x64x32xf32, #tpu.memory_space<vmem>>, vector<1x64x32xf32>
    %7 = vector.shape_cast %6 : vector<1x64x32xf32> to vector<64x32xf32>
    %c1_7 = arith.constant 1 : index
    %c0_8 = arith.constant 0 : index
    %c0_9 = arith.constant 0 : index
    %8 = vector.load %arg2[%c1_7, %c0_8, %c0_9] : memref<9x1x32xf32, #tpu.memory_space<vmem>>, vector<1x1x32xf32>
    %9 = vector.shape_cast %8 : vector<1x1x32xf32> to vector<1x32xf32>
    %10 = vector.broadcast %9 : vector<1x32xf32> to vector<64x32xf32>
    %11 = arith.mulf %7, %10 : vector<64x32xf32>
    %12 = arith.addf %5, %11 : vector<64x32xf32>
    %c2 = arith.constant 2 : index
    %c0_10 = arith.constant 0 : index
    %c0_11 = arith.constant 0 : index
    %13 = vector.load %arg1[%c2, %c0_10, %c0_11] : memref<9x64x32xf32, #tpu.memory_space<vmem>>, vector<1x64x32xf32>
    %14 = vector.shape_cast %13 : vector<1x64x32xf32> to vector<64x32xf32>
    %c2_12 = arith.constant 2 : index
    %c0_13 = arith.constant 0 : index
    %c0_14 = arith.constant 0 : index
    %15 = vector.load %arg2[%c2_12, %c0_13, %c0_14] : memref<9x1x32xf32, #tpu.memory_space<vmem>>, vector<1x1x32xf32>
    %16 = vector.shape_cast %15 : vector<1x1x32xf32> to vector<1x32xf32>
    %17 = vector.broadcast %16 : vector<1x32xf32> to vector<64x32xf32>
    %18 = arith.mulf %14, %17 : vector<64x32xf32>
    %19 = arith.addf %12, %18 : vector<64x32xf32>
    %c3 = arith.constant 3 : index
    %c0_15 = arith.constant 0 : index
    %c0_16 = arith.constant 0 : index
    %20 = vector.load %arg1[%c3, %c0_15, %c0_16] : memref<9x64x32xf32, #tpu.memory_space<vmem>>, vector<1x64x32xf32>
    %21 = vector.shape_cast %20 : vector<1x64x32xf32> to vector<64x32xf32>
    %c3_17 = arith.constant 3 : index
    %c0_18 = arith.constant 0 : index
    %c0_19 = arith.constant 0 : index
    %22 = vector.load %arg2[%c3_17, %c0_18, %c0_19] : memref<9x1x32xf32, #tpu.memory_space<vmem>>, vector<1x1x32xf32>
    %23 = vector.shape_cast %22 : vector<1x1x32xf32> to vector<1x32xf32>
    %24 = vector.broadcast %23 : vector<1x32xf32> to vector<64x32xf32>
    %25 = arith.mulf %21, %24 : vector<64x32xf32>
    %26 = arith.addf %19, %25 : vector<64x32xf32>
    %c4 = arith.constant 4 : index
    %c0_20 = arith.constant 0 : index
    %c0_21 = arith.constant 0 : index
    %27 = vector.load %arg1[%c4, %c0_20, %c0_21] : memref<9x64x32xf32, #tpu.memory_space<vmem>>, vector<1x64x32xf32>
    %28 = vector.shape_cast %27 : vector<1x64x32xf32> to vector<64x32xf32>
    %c4_22 = arith.constant 4 : index
    %c0_23 = arith.constant 0 : index
    %c0_24 = arith.constant 0 : index
    %29 = vector.load %arg2[%c4_22, %c0_23, %c0_24] : memref<9x1x32xf32, #tpu.memory_space<vmem>>, vector<1x1x32xf32>
    %30 = vector.shape_cast %29 : vector<1x1x32xf32> to vector<1x32xf32>
    %31 = vector.broadcast %30 : vector<1x32xf32> to vector<64x32xf32>
    %32 = arith.mulf %28, %31 : vector<64x32xf32>
    %33 = arith.addf %26, %32 : vector<64x32xf32>
    %c5 = arith.constant 5 : index
    %c0_25 = arith.constant 0 : index
    %c0_26 = arith.constant 0 : index
    %34 = vector.load %arg1[%c5, %c0_25, %c0_26] : memref<9x64x32xf32, #tpu.memory_space<vmem>>, vector<1x64x32xf32>
    %35 = vector.shape_cast %34 : vector<1x64x32xf32> to vector<64x32xf32>
    %c5_27 = arith.constant 5 : index
    %c0_28 = arith.constant 0 : index
    %c0_29 = arith.constant 0 : index
    %36 = vector.load %arg2[%c5_27, %c0_28, %c0_29] : memref<9x1x32xf32, #tpu.memory_space<vmem>>, vector<1x1x32xf32>
    %37 = vector.shape_cast %36 : vector<1x1x32xf32> to vector<1x32xf32>
    %38 = vector.broadcast %37 : vector<1x32xf32> to vector<64x32xf32>
    %39 = arith.mulf %35, %38 : vector<64x32xf32>
    %40 = arith.addf %33, %39 : vector<64x32xf32>
    %c6 = arith.constant 6 : index
    %c0_30 = arith.constant 0 : index
    %c0_31 = arith.constant 0 : index
    %41 = vector.load %arg1[%c6, %c0_30, %c0_31] : memref<9x64x32xf32, #tpu.memory_space<vmem>>, vector<1x64x32xf32>
    %42 = vector.shape_cast %41 : vector<1x64x32xf32> to vector<64x32xf32>
    %c6_32 = arith.constant 6 : index
    %c0_33 = arith.constant 0 : index
    %c0_34 = arith.constant 0 : index
    %43 = vector.load %arg2[%c6_32, %c0_33, %c0_34] : memref<9x1x32xf32, #tpu.memory_space<vmem>>, vector<1x1x32xf32>
    %44 = vector.shape_cast %43 : vector<1x1x32xf32> to vector<1x32xf32>
    %45 = vector.broadcast %44 : vector<1x32xf32> to vector<64x32xf32>
    %46 = arith.mulf %42, %45 : vector<64x32xf32>
    %47 = arith.addf %40, %46 : vector<64x32xf32>
    %c7 = arith.constant 7 : index
    %c0_35 = arith.constant 0 : index
    %c0_36 = arith.constant 0 : index
    %48 = vector.load %arg1[%c7, %c0_35, %c0_36] : memref<9x64x32xf32, #tpu.memory_space<vmem>>, vector<1x64x32xf32>
    %49 = vector.shape_cast %48 : vector<1x64x32xf32> to vector<64x32xf32>
    %c7_37 = arith.constant 7 : index
    %c0_38 = arith.constant 0 : index
    %c0_39 = arith.constant 0 : index
    %50 = vector.load %arg2[%c7_37, %c0_38, %c0_39] : memref<9x1x32xf32, #tpu.memory_space<vmem>>, vector<1x1x32xf32>
    %51 = vector.shape_cast %50 : vector<1x1x32xf32> to vector<1x32xf32>
    %52 = vector.broadcast %51 : vector<1x32xf32> to vector<64x32xf32>
    %53 = arith.mulf %49, %52 : vector<64x32xf32>
    %54 = arith.addf %47, %53 : vector<64x32xf32>
    %c8 = arith.constant 8 : index
    %c0_40 = arith.constant 0 : index
    %c0_41 = arith.constant 0 : index
    %55 = vector.load %arg1[%c8, %c0_40, %c0_41] : memref<9x64x32xf32, #tpu.memory_space<vmem>>, vector<1x64x32xf32>
    %56 = vector.shape_cast %55 : vector<1x64x32xf32> to vector<64x32xf32>
    %c8_42 = arith.constant 8 : index
    %c0_43 = arith.constant 0 : index
    %c0_44 = arith.constant 0 : index
    %57 = vector.load %arg2[%c8_42, %c0_43, %c0_44] : memref<9x1x32xf32, #tpu.memory_space<vmem>>, vector<1x1x32xf32>
    %58 = vector.shape_cast %57 : vector<1x1x32xf32> to vector<1x32xf32>
    %59 = vector.broadcast %58 : vector<1x32xf32> to vector<64x32xf32>
    %60 = arith.mulf %56, %59 : vector<64x32xf32>
    %61 = arith.addf %54, %60 : vector<64x32xf32>
    %c0_45 = arith.constant 0 : index
    %c0_46 = arith.constant 0 : index
    %62 = vector.load %arg3[%c0_45, %c0_46] : memref<1x32xf32, #tpu.memory_space<vmem>>, vector<1x32xf32>
    %63 = vector.broadcast %62 : vector<1x32xf32> to vector<64x32xf32>
    %64 = arith.mulf %61, %63 : vector<64x32xf32>
    %c0_47 = arith.constant 0 : index
    %c0_48 = arith.constant 0 : index
    %65 = vector.load %arg4[%c0_47, %c0_48] : memref<1x32xf32, #tpu.memory_space<vmem>>, vector<1x32xf32>
    %66 = vector.broadcast %65 : vector<1x32xf32> to vector<64x32xf32>
    %67 = arith.addf %64, %66 : vector<64x32xf32>
    %cst = arith.constant 0.000000e+00 : f32
    %68 = vector.broadcast %cst : f32 to vector<64x32xf32>
    %69 = arith.maximumf %67, %68 : vector<64x32xf32>
    %c0_49 = arith.constant 0 : index
    %c0_50 = arith.constant 0 : index
    %70 = vector.load %arg5[%c0_49, %c0_50] : memref<32x48xf32, #tpu.memory_space<vmem>>, vector<32x48xf32>
    %cst_51 = arith.constant dense<0.000000e+00> : vector<64x48xf32>
    %71 = tpu.matmul %69, %70, %cst_51 {dimension_numbers = #tpu.dot_dimension_numbers<[1], [0], [0], [1], [0, 0, 1, 1], [], []>} : vector<64x32xf32>, vector<32x48xf32>, vector<64x48xf32> -> vector<64x48xf32>
    %c0_52 = arith.constant 0 : index
    %c0_53 = arith.constant 0 : index
    %72 = vector.load %arg6[%c0_52, %c0_53] : memref<1x48xf32, #tpu.memory_space<vmem>>, vector<1x48xf32>
    %73 = vector.broadcast %72 : vector<1x48xf32> to vector<64x48xf32>
    %74 = arith.mulf %71, %73 : vector<64x48xf32>
    %c0_54 = arith.constant 0 : index
    %c0_55 = arith.constant 0 : index
    %75 = vector.load %arg7[%c0_54, %c0_55] : memref<1x48xf32, #tpu.memory_space<vmem>>, vector<1x48xf32>
    %76 = vector.broadcast %75 : vector<1x48xf32> to vector<64x48xf32>
    %77 = arith.addf %74, %76 : vector<64x48xf32>
    %cst_56 = arith.constant 0.000000e+00 : f32
    %78 = vector.broadcast %cst_56 : f32 to vector<64x48xf32>
    %79 = arith.maximumf %77, %78 : vector<64x48xf32>
    %c0_57 = arith.constant 0 : index
    %c0_58 = arith.constant 0 : index
    %80 = vector.load %arg8[%c0_57, %c0_58] : memref<64x48xf32, #tpu.memory_space<vmem>>, vector<64x48xf32>
    tpu.vector_store %arg8[%c0_57, %c0_58], %79 {strides = array<i32>} : memref<64x48xf32, #tpu.memory_space<vmem>>, vector<64x48xf32>,
    return
  }
  func.func @transform_0(%arg0: i32) -> (i32, i32, i32) {
    %c0_i32 = arith.constant 0 : i32
    %c0_i32_0 = arith.constant 0 : i32
    %c0_i32_1 = arith.constant 0 : i32
    return %c0_i32, %arg0, %c0_i32_0 : i32, i32, i32
  }
  func.func @transform_1(%arg0: i32) -> (i32, i32, i32) {
    %c0_i32 = arith.constant 0 : i32
    %c0_i32_0 = arith.constant 0 : i32
    %c0_i32_1 = arith.constant 0 : i32
    %c0_i32_2 = arith.constant 0 : i32
    return %c0_i32, %c0_i32_0, %c0_i32_1 : i32, i32, i32
  }
  func.func @transform_2(%arg0: i32) -> (i32, i32) {
    %c0_i32 = arith.constant 0 : i32
    %c0_i32_0 = arith.constant 0 : i32
    %c0_i32_1 = arith.constant 0 : i32
    return %c0_i32, %c0_i32_0 : i32, i32
  }
  func.func @transform_3(%arg0: i32) -> (i32, i32) {
    %c0_i32 = arith.constant 0 : i32
    %c0_i32_0 = arith.constant 0 : i32
    %c0_i32_1 = arith.constant 0 : i32
    return %c0_i32, %c0_i32_0 : i32, i32
  }
  func.func @transform_4(%arg0: i32) -> (i32, i32) {
    %c0_i32 = arith.constant 0 : i32
    %c0_i32_0 = arith.constant 0 : i32
    %c0_i32_1 = arith.constant 0 : i32
    return %c0_i32, %c0_i32_0 : i32, i32
  }
  func.func @transform_5(%arg0: i32) -> (i32, i32) {
    %c0_i32 = arith.constant 0 : i32
    %c0_i32_0 = arith.constant 0 : i32
    %c0_i32_1 = arith.constant 0 : i32
    return %c0_i32, %c0_i32_0 : i32, i32
  }
  func.func @transform_6(%arg0: i32) -> (i32, i32) {
    %c0_i32 = arith.constant 0 : i32
    %c0_i32_0 = arith.constant 0 : i32
    %c0_i32_1 = arith.constant 0 : i32
    return %c0_i32, %c0_i32_0 : i32, i32
  }
  func.func @transform_7(%arg0: i32) -> (i32, i32) {
    %c0_i32 = arith.constant 0 : i32
    %c0_i32_0 = arith.constant 0 : i32
    return %arg0, %c0_i32 : i32, i32
  }
}

module attributes {stable_mosaic.version = 11 : i64} {
  func.func @dsconv_fused_kernel(%arg0: i32, %arg1: memref<9x16x48xf32, #tpu.memory_space<vmem>>, %arg2: memref<9x1x48xf32, #tpu.memory_space<vmem>>, %arg3: memref<1x48xf32, #tpu.memory_space<vmem>>, %arg4: memref<1x48xf32, #tpu.memory_space<vmem>>, %arg5: memref<48x64xf32, #tpu.memory_space<vmem>>, %arg6: memref<1x64xf32, #tpu.memory_space<vmem>>, %arg7: memref<1x64xf32, #tpu.memory_space<vmem>>, %arg8: memref<16x64xf32, #tpu.memory_space<vmem>>) attributes {dimension_semantics = [#tpu.dimension_semantics<parallel>], iteration_bounds = array<i64: 2>, scalar_prefetch = 0 : i64, scratch_operands = 0 : i64, tpu.core_type = #tpu.core_type<tc>, window_params = [{transform_indices = @transform_0, window_bounds = array<i64: 9, 16, 48>}, {pipeline_mode = #tpu.pipeline_mode<synchronous>, transform_indices = @transform_1, window_bounds = array<i64: 9, 1, 48>}, {pipeline_mode = #tpu.pipeline_mode<synchronous>, transform_indices = @transform_2, window_bounds = array<i64: 1, 48>}, {pipeline_mode = #tpu.pipeline_mode<synchronous>, transform_indices = @transform_3, window_bounds = array<i64: 1, 48>}, {pipeline_mode = #tpu.pipeline_mode<synchronous>, transform_indices = @transform_4, window_bounds = array<i64: 48, 64>}, {pipeline_mode = #tpu.pipeline_mode<synchronous>, transform_indices = @transform_5, window_bounds = array<i64: 1, 64>}, {pipeline_mode = #tpu.pipeline_mode<synchronous>, transform_indices = @transform_6, window_bounds = array<i64: 1, 64>}, {transform_indices = @transform_7, window_bounds = array<i64: 16, 64>}]} {
    %c0 = arith.constant 0 : index
    %c0_0 = arith.constant 0 : index
    %c0_1 = arith.constant 0 : index
    %0 = vector.load %arg1[%c0, %c0_0, %c0_1] : memref<9x16x48xf32, #tpu.memory_space<vmem>>, vector<1x16x48xf32>
    %1 = vector.shape_cast %0 : vector<1x16x48xf32> to vector<16x48xf32>
    %c0_2 = arith.constant 0 : index
    %c0_3 = arith.constant 0 : index
    %c0_4 = arith.constant 0 : index
    %2 = vector.load %arg2[%c0_2, %c0_3, %c0_4] : memref<9x1x48xf32, #tpu.memory_space<vmem>>, vector<1x1x48xf32>
    %3 = vector.shape_cast %2 : vector<1x1x48xf32> to vector<1x48xf32>
    %4 = vector.broadcast %3 : vector<1x48xf32> to vector<16x48xf32>
    %5 = arith.mulf %1, %4 : vector<16x48xf32>
    %c1 = arith.constant 1 : index
    %c0_5 = arith.constant 0 : index
    %c0_6 = arith.constant 0 : index
    %6 = vector.load %arg1[%c1, %c0_5, %c0_6] : memref<9x16x48xf32, #tpu.memory_space<vmem>>, vector<1x16x48xf32>
    %7 = vector.shape_cast %6 : vector<1x16x48xf32> to vector<16x48xf32>
    %c1_7 = arith.constant 1 : index
    %c0_8 = arith.constant 0 : index
    %c0_9 = arith.constant 0 : index
    %8 = vector.load %arg2[%c1_7, %c0_8, %c0_9] : memref<9x1x48xf32, #tpu.memory_space<vmem>>, vector<1x1x48xf32>
    %9 = vector.shape_cast %8 : vector<1x1x48xf32> to vector<1x48xf32>
    %10 = vector.broadcast %9 : vector<1x48xf32> to vector<16x48xf32>
    %11 = arith.mulf %7, %10 : vector<16x48xf32>
    %12 = arith.addf %5, %11 : vector<16x48xf32>
    %c2 = arith.constant 2 : index
    %c0_10 = arith.constant 0 : index
    %c0_11 = arith.constant 0 : index
    %13 = vector.load %arg1[%c2, %c0_10, %c0_11] : memref<9x16x48xf32, #tpu.memory_space<vmem>>, vector<1x16x48xf32>
    %14 = vector.shape_cast %13 : vector<1x16x48xf32> to vector<16x48xf32>
    %c2_12 = arith.constant 2 : index
    %c0_13 = arith.constant 0 : index
    %c0_14 = arith.constant 0 : index
    %15 = vector.load %arg2[%c2_12, %c0_13, %c0_14] : memref<9x1x48xf32, #tpu.memory_space<vmem>>, vector<1x1x48xf32>
    %16 = vector.shape_cast %15 : vector<1x1x48xf32> to vector<1x48xf32>
    %17 = vector.broadcast %16 : vector<1x48xf32> to vector<16x48xf32>
    %18 = arith.mulf %14, %17 : vector<16x48xf32>
    %19 = arith.addf %12, %18 : vector<16x48xf32>
    %c3 = arith.constant 3 : index
    %c0_15 = arith.constant 0 : index
    %c0_16 = arith.constant 0 : index
    %20 = vector.load %arg1[%c3, %c0_15, %c0_16] : memref<9x16x48xf32, #tpu.memory_space<vmem>>, vector<1x16x48xf32>
    %21 = vector.shape_cast %20 : vector<1x16x48xf32> to vector<16x48xf32>
    %c3_17 = arith.constant 3 : index
    %c0_18 = arith.constant 0 : index
    %c0_19 = arith.constant 0 : index
    %22 = vector.load %arg2[%c3_17, %c0_18, %c0_19] : memref<9x1x48xf32, #tpu.memory_space<vmem>>, vector<1x1x48xf32>
    %23 = vector.shape_cast %22 : vector<1x1x48xf32> to vector<1x48xf32>
    %24 = vector.broadcast %23 : vector<1x48xf32> to vector<16x48xf32>
    %25 = arith.mulf %21, %24 : vector<16x48xf32>
    %26 = arith.addf %19, %25 : vector<16x48xf32>
    %c4 = arith.constant 4 : index
    %c0_20 = arith.constant 0 : index
    %c0_21 = arith.constant 0 : index
    %27 = vector.load %arg1[%c4, %c0_20, %c0_21] : memref<9x16x48xf32, #tpu.memory_space<vmem>>, vector<1x16x48xf32>
    %28 = vector.shape_cast %27 : vector<1x16x48xf32> to vector<16x48xf32>
    %c4_22 = arith.constant 4 : index
    %c0_23 = arith.constant 0 : index
    %c0_24 = arith.constant 0 : index
    %29 = vector.load %arg2[%c4_22, %c0_23, %c0_24] : memref<9x1x48xf32, #tpu.memory_space<vmem>>, vector<1x1x48xf32>
    %30 = vector.shape_cast %29 : vector<1x1x48xf32> to vector<1x48xf32>
    %31 = vector.broadcast %30 : vector<1x48xf32> to vector<16x48xf32>
    %32 = arith.mulf %28, %31 : vector<16x48xf32>
    %33 = arith.addf %26, %32 : vector<16x48xf32>
    %c5 = arith.constant 5 : index
    %c0_25 = arith.constant 0 : index
    %c0_26 = arith.constant 0 : index
    %34 = vector.load %arg1[%c5, %c0_25, %c0_26] : memref<9x16x48xf32, #tpu.memory_space<vmem>>, vector<1x16x48xf32>
    %35 = vector.shape_cast %34 : vector<1x16x48xf32> to vector<16x48xf32>
    %c5_27 = arith.constant 5 : index
    %c0_28 = arith.constant 0 : index
    %c0_29 = arith.constant 0 : index
    %36 = vector.load %arg2[%c5_27, %c0_28, %c0_29] : memref<9x1x48xf32, #tpu.memory_space<vmem>>, vector<1x1x48xf32>
    %37 = vector.shape_cast %36 : vector<1x1x48xf32> to vector<1x48xf32>
    %38 = vector.broadcast %37 : vector<1x48xf32> to vector<16x48xf32>
    %39 = arith.mulf %35, %38 : vector<16x48xf32>
    %40 = arith.addf %33, %39 : vector<16x48xf32>
    %c6 = arith.constant 6 : index
    %c0_30 = arith.constant 0 : index
    %c0_31 = arith.constant 0 : index
    %41 = vector.load %arg1[%c6, %c0_30, %c0_31] : memref<9x16x48xf32, #tpu.memory_space<vmem>>, vector<1x16x48xf32>
    %42 = vector.shape_cast %41 : vector<1x16x48xf32> to vector<16x48xf32>
    %c6_32 = arith.constant 6 : index
    %c0_33 = arith.constant 0 : index
    %c0_34 = arith.constant 0 : index
    %43 = vector.load %arg2[%c6_32, %c0_33, %c0_34] : memref<9x1x48xf32, #tpu.memory_space<vmem>>, vector<1x1x48xf32>
    %44 = vector.shape_cast %43 : vector<1x1x48xf32> to vector<1x48xf32>
    %45 = vector.broadcast %44 : vector<1x48xf32> to vector<16x48xf32>
    %46 = arith.mulf %42, %45 : vector<16x48xf32>
    %47 = arith.addf %40, %46 : vector<16x48xf32>
    %c7 = arith.constant 7 : index
    %c0_35 = arith.constant 0 : index
    %c0_36 = arith.constant 0 : index
    %48 = vector.load %arg1[%c7, %c0_35, %c0_36] : memref<9x16x48xf32, #tpu.memory_space<vmem>>, vector<1x16x48xf32>
    %49 = vector.shape_cast %48 : vector<1x16x48xf32> to vector<16x48xf32>
    %c7_37 = arith.constant 7 : index
    %c0_38 = arith.constant 0 : index
    %c0_39 = arith.constant 0 : index
    %50 = vector.load %arg2[%c7_37, %c0_38, %c0_39] : memref<9x1x48xf32, #tpu.memory_space<vmem>>, vector<1x1x48xf32>
    %51 = vector.shape_cast %50 : vector<1x1x48xf32> to vector<1x48xf32>
    %52 = vector.broadcast %51 : vector<1x48xf32> to vector<16x48xf32>
    %53 = arith.mulf %49, %52 : vector<16x48xf32>
    %54 = arith.addf %47, %53 : vector<16x48xf32>
    %c8 = arith.constant 8 : index
    %c0_40 = arith.constant 0 : index
    %c0_41 = arith.constant 0 : index
    %55 = vector.load %arg1[%c8, %c0_40, %c0_41] : memref<9x16x48xf32, #tpu.memory_space<vmem>>, vector<1x16x48xf32>
    %56 = vector.shape_cast %55 : vector<1x16x48xf32> to vector<16x48xf32>
    %c8_42 = arith.constant 8 : index
    %c0_43 = arith.constant 0 : index
    %c0_44 = arith.constant 0 : index
    %57 = vector.load %arg2[%c8_42, %c0_43, %c0_44] : memref<9x1x48xf32, #tpu.memory_space<vmem>>, vector<1x1x48xf32>
    %58 = vector.shape_cast %57 : vector<1x1x48xf32> to vector<1x48xf32>
    %59 = vector.broadcast %58 : vector<1x48xf32> to vector<16x48xf32>
    %60 = arith.mulf %56, %59 : vector<16x48xf32>
    %61 = arith.addf %54, %60 : vector<16x48xf32>
    %c0_45 = arith.constant 0 : index
    %c0_46 = arith.constant 0 : index
    %62 = vector.load %arg3[%c0_45, %c0_46] : memref<1x48xf32, #tpu.memory_space<vmem>>, vector<1x48xf32>
    %63 = vector.broadcast %62 : vector<1x48xf32> to vector<16x48xf32>
    %64 = arith.mulf %61, %63 : vector<16x48xf32>
    %c0_47 = arith.constant 0 : index
    %c0_48 = arith.constant 0 : index
    %65 = vector.load %arg4[%c0_47, %c0_48] : memref<1x48xf32, #tpu.memory_space<vmem>>, vector<1x48xf32>
    %66 = vector.broadcast %65 : vector<1x48xf32> to vector<16x48xf32>
    %67 = arith.addf %64, %66 : vector<16x48xf32>
    %cst = arith.constant 0.000000e+00 : f32
    %68 = vector.broadcast %cst : f32 to vector<16x48xf32>
    %69 = arith.maximumf %67, %68 : vector<16x48xf32>
    %c0_49 = arith.constant 0 : index
    %c0_50 = arith.constant 0 : index
    %70 = vector.load %arg5[%c0_49, %c0_50] : memref<48x64xf32, #tpu.memory_space<vmem>>, vector<48x64xf32>
    %cst_51 = arith.constant dense<0.000000e+00> : vector<16x64xf32>
    %71 = tpu.matmul %69, %70, %cst_51 {dimension_numbers = #tpu.dot_dimension_numbers<[1], [0], [0], [1], [0, 0, 1, 1], [], []>} : vector<16x48xf32>, vector<48x64xf32>, vector<16x64xf32> -> vector<16x64xf32>
    %c0_52 = arith.constant 0 : index
    %c0_53 = arith.constant 0 : index
    %72 = vector.load %arg6[%c0_52, %c0_53] : memref<1x64xf32, #tpu.memory_space<vmem>>, vector<1x64xf32>
    %73 = vector.broadcast %72 : vector<1x64xf32> to vector<16x64xf32>
    %74 = arith.mulf %71, %73 : vector<16x64xf32>
    %c0_54 = arith.constant 0 : index
    %c0_55 = arith.constant 0 : index
    %75 = vector.load %arg7[%c0_54, %c0_55] : memref<1x64xf32, #tpu.memory_space<vmem>>, vector<1x64xf32>
    %76 = vector.broadcast %75 : vector<1x64xf32> to vector<16x64xf32>
    %77 = arith.addf %74, %76 : vector<16x64xf32>
    %cst_56 = arith.constant 0.000000e+00 : f32
    %78 = vector.broadcast %cst_56 : f32 to vector<16x64xf32>
    %79 = arith.maximumf %77, %78 : vector<16x64xf32>
    %c0_57 = arith.constant 0 : index
    %c0_58 = arith.constant 0 : index
    %80 = vector.load %arg8[%c0_57, %c0_58] : memref<16x64xf32, #tpu.memory_space<vmem>>, vector<16x64xf32>
    tpu.vector_store %arg8[%c0_57, %c0_58], %79 {strides = array<i32>} : memref<16x64xf32, #tpu.memory_space<vmem>>, vector<16x64xf32>,
    return
  }
  func.func @transform_0(%arg0: i32) -> (i32, i32, i32) {
    %c0_i32 = arith.constant 0 : i32
    %c0_i32_0 = arith.constant 0 : i32
    %c0_i32_1 = arith.constant 0 : i32
    return %c0_i32, %arg0, %c0_i32_0 : i32, i32, i32
  }
  func.func @transform_1(%arg0: i32) -> (i32, i32, i32) {
    %c0_i32 = arith.constant 0 : i32
    %c0_i32_0 = arith.constant 0 : i32
    %c0_i32_1 = arith.constant 0 : i32
    %c0_i32_2 = arith.constant 0 : i32
    return %c0_i32, %c0_i32_0, %c0_i32_1 : i32, i32, i32
  }
  func.func @transform_2(%arg0: i32) -> (i32, i32) {
    %c0_i32 = arith.constant 0 : i32
    %c0_i32_0 = arith.constant 0 : i32
    %c0_i32_1 = arith.constant 0 : i32
    return %c0_i32, %c0_i32_0 : i32, i32
  }
  func.func @transform_3(%arg0: i32) -> (i32, i32) {
    %c0_i32 = arith.constant 0 : i32
    %c0_i32_0 = arith.constant 0 : i32
    %c0_i32_1 = arith.constant 0 : i32
    return %c0_i32, %c0_i32_0 : i32, i32
  }
  func.func @transform_4(%arg0: i32) -> (i32, i32) {
    %c0_i32 = arith.constant 0 : i32
    %c0_i32_0 = arith.constant 0 : i32
    %c0_i32_1 = arith.constant 0 : i32
    return %c0_i32, %c0_i32_0 : i32, i32
  }
  func.func @transform_5(%arg0: i32) -> (i32, i32) {
    %c0_i32 = arith.constant 0 : i32
    %c0_i32_0 = arith.constant 0 : i32
    %c0_i32_1 = arith.constant 0 : i32
    return %c0_i32, %c0_i32_0 : i32, i32
  }
  func.func @transform_6(%arg0: i32) -> (i32, i32) {
    %c0_i32 = arith.constant 0 : i32
    %c0_i32_0 = arith.constant 0 : i32
    %c0_i32_1 = arith.constant 0 : i32
    return %c0_i32, %c0_i32_0 : i32, i32
  }
  func.func @transform_7(%arg0: i32) -> (i32, i32) {
    %c0_i32 = arith.constant 0 : i32
    %c0_i32_0 = arith.constant 0 : i32
    return %arg0, %c0_i32 : i32, i32
  }
}

</mosaic_0001>

<bundles_post_ra>
// kernel: learning_to_downsample.4
= control target key start
LH: loop header
LB: loop body
LE: loop exit
PB: predicated region body
PF: predicated region fallthrough
CT: control target
= control target key end

     0   :  { %s1404_s24 = smov 0   ;;  %s1406_s25 = smov 0   ;;  %s1874_s0 = inlined_call_operand.vmem [shape: f32[9,128,32], index: 0, kind: input, shape index: {}]   ;;  %s1875_s1 = inlined_call_operand.vmem [shape: f32[9,1,32], index: 1, kind: input, shape index: {}]   ;;  %s1876_s2 = inlined_call_operand.vmem [shape: f32[1,32], index: 2, kind: input, shape index: {}]   ;;  %s1877_s3 = inlined_call_operand.vmem [shape: f32[1,32], index: 3, kind: input, shape index: {}]   ;;  %s1878_s4 = inlined_call_operand.vmem [shape: f32[32,48], index: 4, kind: input, shape index: {}]   ;;  %s1879_s5 = inlined_call_operand.vmem [shape: f32[1,48], index: 5, kind: input, shape index: {}]   ;;  %s1880_s6 = inlined_call_operand.vmem [shape: f32[1,48], index: 6, kind: input, shape index: {}]   ;;  %s1881_s7 = inlined_call_operand.vmem [shape: f32[128,48], index: 7, kind: output, shape index: {}]  }
   0x1   :  { %s1408_s26 = smov 0  }
   0x2 LB: > { %s1169_s27 = sadd.s32 4294967295, %s1362_s26   ;;  %s1421_s28 = sadd.s32 1, %s1362_s26   ;;  %s1362_s26 = sphi %s1408_s26, %s1884_s26   ;;  %s1358_s25 = sphi %s1406_s25, %s1883_s25   ;;  %s1354_s24 = sphi %s1404_s24, %s1882_s24  }
   0x3   : > { %s21_s29 = ssub.s32 %s1362_s26, %s1421_s28  ;;  %s24_s30 = sadd.s32 1, %s1358_s25 }
   0x4   : > { %p22_p0 = scmp.eq.s32.totalorder %s21_s29, 0  ;;  %p31_p1 = scmp.ne.s32.totalorder %s1358_s25, %s1354_s24 }
   0x5   : > { %p32_p2 = scmp.eq.s32.totalorder %s1362_s26, 0  ;;  %p1172_p4 = scmp.ge.s32.totalorder %s1362_s26, 2 }
   0x6   : > { %s1430_s8 = scalar_select %p22_p0, %s1358_s25, %s24_s30  }
   0x7   : > { %p33_p3 = por %p32_p2, %p31_p1  ;;  %227 = sbr.rel (%p1172_p4) target bundleno = 53 (0x35), region = 40 }
   0xc   : > { %230 = sbr.rel (!%p33_p3) target bundleno = 53 (0x35), region = 44  ;;  %s232_s9 = sand.u32 (%p33_p3), 1, %s1358_s25  }
   0xd   : > { %s1273_s10 = sshll.u32 (%p33_p3), %s1362_s26, 6  ;;  %s1314_s11 = smul.u32 (%p33_p3), 576, %s232_s9 }
   0xe   : > { %s1438_s14 = scalar_lea.vmem (%p33_p3), %s1874_s0, %s1273_s10 }
   0xf   : > { %v408_v0 = vld [vmem:[%s1438_s14] sm:$0xff] (%p33_p3)  ;;  %v410_v1 = vld [vmem:[%s1438_s14 + $0x8] sm:$0xff] (%p33_p3)  ;;  %v412_v2 = vld [vmem:[%s1438_s14 + $0x10] sm:$0xff] (%p33_p3)  ;;  %s1446_s15 = scalar_lea.vmem (%p33_p3), [#allocation2], %s1314_s11 }
  0x10   : > { %v414_v3 = vld [vmem:[%s1438_s14 + $0x18] sm:$0xff] (%p33_p3)  ;;  %v416_v4 = vld [vmem:[%s1438_s14 + $0x20] sm:$0xff] (%p33_p3)  ;;  %v418_v5 = vld [vmem:[%s1438_s14 + $0x28] sm:$0xff] (%p33_p3)  ;;  %409 = vst [vmem:[%s1446_s15] sm:$0xff] (%p33_p3), %v408_v0 }
  0x11   : > { %411 = vst [vmem:[%s1446_s15 + $0x8] sm:$0xff] %v410_v1  ;;  %413 = vst [vmem:[%s1446_s15 + $0x10] sm:$0xff] %v412_v2  ;;  %v420_v6 = vld [vmem:[%s1438_s14 + $0x30] sm:$0xff]  ;;  %v422_v7 = vld [vmem:[%s1438_s14 + $0x38] sm:$0xff] }
  0x12   : > { %415 = vst [vmem:[%s1446_s15 + $0x18] sm:$0xff] %v414_v3  ;;  %417 = vst [vmem:[%s1446_s15 + $0x20] sm:$0xff] %v416_v4  ;;  %v424_v8 = vld [vmem:[%s1438_s14 + $0x80] sm:$0xff]  ;;  %v426_v9 = vld [vmem:[%s1438_s14 + $0x88] sm:$0xff] }
  0x13   : > { %419 = vst [vmem:[%s1446_s15 + $0x28] sm:$0xff] %v418_v5  ;;  %421 = vst [vmem:[%s1446_s15 + $0x30] sm:$0xff] %v420_v6  ;;  %v428_v10 = vld [vmem:[%s1438_s14 + $0x90] sm:$0xff]  ;;  %v430_v11 = vld [vmem:[%s1438_s14 + $0x98] sm:$0xff] }
  0x14   : > { %423 = vst [vmem:[%s1446_s15 + $0x38] sm:$0xff] %v422_v7  ;;  %425 = vst [vmem:[%s1446_s15 + $0x40] sm:$0xff] %v424_v8  ;;  %v432_v12 = vld [vmem:[%s1438_s14 + $0xa0] sm:$0xff]  ;;  %v434_v13 = vld [vmem:[%s1438_s14 + $0xa8] sm:$0xff] }
  0x15   : > { %427 = vst [vmem:[%s1446_s15 + $0x48] sm:$0xff] %v426_v9  ;;  %429 = vst [vmem:[%s1446_s15 + $0x50] sm:$0xff] %v428_v10  ;;  %v436_v14 = vld [vmem:[%s1438_s14 + $0xb0] sm:$0xff]  ;;  %v438_v15 = vld [vmem:[%s1438_s14 + $0xb8] sm:$0xff] }
  0x16   : > { %431 = vst [vmem:[%s1446_s15 + $0x58] sm:$0xff] %v430_v11  ;;  %433 = vst [vmem:[%s1446_s15 + $0x60] sm:$0xff] %v432_v12  ;;  %v440_v16 = vld [vmem:[%s1438_s14 + $0x100] sm:$0xff]  ;;  %v442_v17 = vld [vmem:[%s1438_s14 + $0x108] sm:$0xff] }
  0x17   : > { %435 = vst [vmem:[%s1446_s15 + $0x68] sm:$0xff] %v434_v13  ;;  %437 = vst [vmem:[%s1446_s15 + $0x70] sm:$0xff] %v436_v14  ;;  %v444_v18 = vld [vmem:[%s1438_s14 + $0x110] sm:$0xff]  ;;  %v446_v19 = vld [vmem:[%s1438_s14 + $0x118] sm:$0xff] }
  0x18   : > { %439 = vst [vmem:[%s1446_s15 + $0x78] sm:$0xff] %v438_v15  ;;  %441 = vst [vmem:[%s1446_s15 + $0x80] sm:$0xff] %v440_v16  ;;  %v448_v20 = vld [vmem:[%s1438_s14 + $0x120] sm:$0xff]  ;;  %v450_v21 = vld [vmem:[%s1438_s14 + $0x128] sm:$0xff] }
  0x19   : > { %443 = vst [vmem:[%s1446_s15 + $0x88] sm:$0xff] %v442_v17  ;;  %445 = vst [vmem:[%s1446_s15 + $0x90] sm:$0xff] %v444_v18  ;;  %v452_v22 = vld [vmem:[%s1438_s14 + $0x130] sm:$0xff]  ;;  %v454_v23 = vld [vmem:[%s1438_s14 + $0x138] sm:$0xff] }
  0x1a   : > { %447 = vst [vmem:[%s1446_s15 + $0x98] sm:$0xff] %v446_v19  ;;  %449 = vst [vmem:[%s1446_s15 + $0xa0] sm:$0xff] %v448_v20  ;;  %v456_v24 = vld [vmem:[%s1438_s14 + $0x180] sm:$0xff]  ;;  %v458_v25 = vld [vmem:[%s1438_s14 + $0x188] sm:$0xff] }
  0x1b   : > { %451 = vst [vmem:[%s1446_s15 + $0xa8] sm:$0xff] %v450_v21  ;;  %453 = vst [vmem:[%s1446_s15 + $0xb0] sm:$0xff] %v452_v22  ;;  %v460_v26 = vld [vmem:[%s1438_s14 + $0x190] sm:$0xff]  ;;  %v462_v27 = vld [vmem:[%s1438_s14 + $0x198] sm:$0xff] }
  0x1c   : > { %455 = vst [vmem:[%s1446_s15 + $0xb8] sm:$0xff] %v454_v23  ;;  %457 = vst [vmem:[%s1446_s15 + $0xc0] sm:$0xff] %v456_v24  ;;  %v464_v28 = vld [vmem:[%s1438_s14 + $0x1a0] sm:$0xff]  ;;  %v466_v29 = vld [vmem:[%s1438_s14 + $0x1a8] sm:$0xff] }
  0x1d   : > { %459 = vst [vmem:[%s1446_s15 + $0xc8] sm:$0xff] %v458_v25  ;;  %461 = vst [vmem:[%s1446_s15 + $0xd0] sm:$0xff] %v460_v26  ;;  %v468_v30 = vld [vmem:[%s1438_s14 + $0x1b0] sm:$0xff]  ;;  %v470_v31 = vld [vmem:[%s1438_s14 + $0x1b8] sm:$0xff] }
  0x1e   : > { %463 = vst [vmem:[%s1446_s15 + $0xd8] sm:$0xff] %v462_v27  ;;  %465 = vst [vmem:[%s1446_s15 + $0xe0] sm:$0xff] %v464_v28  ;;  %v472_v32 = vld [vmem:[%s1438_s14 + $0x200] sm:$0xff]  ;;  %v474_v33 = vld [vmem:[%s1438_s14 + $0x208] sm:$0xff] }
  0x1f   : > { %467 = vst [vmem:[%s1446_s15 + $0xe8] sm:$0xff] %v466_v29  ;;  %469 = vst [vmem:[%s1446_s15 + $0xf0] sm:$0xff] %v468_v30  ;;  %v476_v34 = vld [vmem:[%s1438_s14 + $0x210] sm:$0xff]  ;;  %v478_v35 = vld [vmem:[%s1438_s14 + $0x218] sm:$0xff] }
  0x20   : > { %471 = vst [vmem:[%s1446_s15 + $0xf8] sm:$0xff] %v470_v31  ;;  %473 = vst [vmem:[%s1446_s15 + $0x100] sm:$0xff] %v472_v32  ;;  %v480_v36 = vld [vmem:[%s1438_s14 + $0x220] sm:$0xff]  ;;  %v482_v37 = vld [vmem:[%s1438_s14 + $0x228] sm:$0xff] }
  0x21   : > { %475 = vst [vmem:[%s1446_s15 + $0x108] sm:$0xff] %v474_v33  ;;  %477 = vst [vmem:[%s1446_s15 + $0x110] sm:$0xff] %v476_v34  ;;  %v484_v38 = vld [vmem:[%s1438_s14 + $0x230] sm:$0xff]  ;;  %v486_v39 = vld [vmem:[%s1438_s14 + $0x238] sm:$0xff] }
  0x22   : > { %479 = vst [vmem:[%s1446_s15 + $0x118] sm:$0xff] %v478_v35  ;;  %481 = vst [vmem:[%s1446_s15 + $0x120] sm:$0xff] %v480_v36  ;;  %v488_v40 = vld [vmem:[%s1438_s14 + $0x280] sm:$0xff]  ;;  %v490_v41 = vld [vmem:[%s1438_s14 + $0x288] sm:$0xff] }
  0x23   : > { %483 = vst [vmem:[%s1446_s15 + $0x128] sm:$0xff] %v482_v37  ;;  %485 = vst [vmem:[%s1446_s15 + $0x130] sm:$0xff] %v484_v38  ;;  %v492_v42 = vld [vmem:[%s1438_s14 + $0x290] sm:$0xff]  ;;  %v494_v43 = vld [vmem:[%s1438_s14 + $0x298] sm:$0xff] }
  0x24   : > { %487 = vst [vmem:[%s1446_s15 + $0x138] sm:$0xff] %v486_v39  ;;  %489 = vst [vmem:[%s1446_s15 + $0x140] sm:$0xff] %v488_v40  ;;  %v496_v44 = vld [vmem:[%s1438_s14 + $0x2a0] sm:$0xff]  ;;  %v498_v45 = vld [vmem:[%s1438_s14 + $0x2a8] sm:$0xff] }
  0x25   : > { %491 = vst [vmem:[%s1446_s15 + $0x148] sm:$0xff] %v490_v41  ;;  %493 = vst [vmem:[%s1446_s15 + $0x150] sm:$0xff] %v492_v42  ;;  %v500_v46 = vld [vmem:[%s1438_s14 + $0x2b0] sm:$0xff]  ;;  %v502_v47 = vld [vmem:[%s1438_s14 + $0x2b8] sm:$0xff] }
  0x26   : > { %495 = vst [vmem:[%s1446_s15 + $0x158] sm:$0xff] %v494_v43  ;;  %497 = vst [vmem:[%s1446_s15 + $0x160] sm:$0xff] %v496_v44  ;;  %v504_v48 = vld [vmem:[%s1438_s14 + $0x300] sm:$0xff]  ;;  %v506_v49 = vld [vmem:[%s1438_s14 + $0x308] sm:$0xff] }
  0x27   : > { %499 = vst [vmem:[%s1446_s15 + $0x168] sm:$0xff] %v498_v45  ;;  %501 = vst [vmem:[%s1446_s15 + $0x170] sm:$0xff] %v500_v46  ;;  %v508_v50 = vld [vmem:[%s1438_s14 + $0x310] sm:$0xff]  ;;  %v510_v51 = vld [vmem:[%s1438_s14 + $0x318] sm:$0xff] }
  0x28   : > { %503 = vst [vmem:[%s1446_s15 + $0x178] sm:$0xff] %v502_v47  ;;  %505 = vst [vmem:[%s1446_s15 + $0x180] sm:$0xff] %v504_v48  ;;  %v512_v52 = vld [vmem:[%s1438_s14 + $0x320] sm:$0xff]  ;;  %v514_v53 = vld [vmem:[%s1438_s14 + $0x328] sm:$0xff] }
  0x29   : > { %507 = vst [vmem:[%s1446_s15 + $0x188] sm:$0xff] %v506_v49  ;;  %509 = vst [vmem:[%s1446_s15 + $0x190] sm:$0xff] %v508_v50  ;;  %v516_v54 = vld [vmem:[%s1438_s14 + $0x330] sm:$0xff]  ;;  %v518_v55 = vld [vmem:[%s1438_s14 + $0x338] sm:$0xff] }
  0x2a   : > { %511 = vst [vmem:[%s1446_s15 + $0x198] sm:$0xff] %v510_v51  ;;  %513 = vst [vmem:[%s1446_s15 + $0x1a0] sm:$0xff] %v512_v52  ;;  %v520_v56 = vld [vmem:[%s1438_s14 + $0x380] sm:$0xff]  ;;  %v522_v57 = vld [vmem:[%s1438_s14 + $0x388] sm:$0xff] }
  0x2b   : > { %515 = vst [vmem:[%s1446_s15 + $0x1a8] sm:$0xff] %v514_v53  ;;  %517 = vst [vmem:[%s1446_s15 + $0x1b0] sm:$0xff] %v516_v54  ;;  %v524_v58 = vld [vmem:[%s1438_s14 + $0x390] sm:$0xff]  ;;  %v526_v59 = vld [vmem:[%s1438_s14 + $0x398] sm:$0xff] }
  0x2c   : > { %519 = vst [vmem:[%s1446_s15 + $0x1b8] sm:$0xff] %v518_v55  ;;  %521 = vst [vmem:[%s1446_s15 + $0x1c0] sm:$0xff] %v520_v56  ;;  %v528_v60 = vld [vmem:[%s1438_s14 + $0x3a0] sm:$0xff]  ;;  %v530_v61 = vld [vmem:[%s1438_s14 + $0x3a8] sm:$0xff] }
  0x2d   : > { %523 = vst [vmem:[%s1446_s15 + $0x1c8] sm:$0xff] %v522_v57  ;;  %525 = vst [vmem:[%s1446_s15 + $0x1d0] sm:$0xff] %v524_v58  ;;  %v532_v62 = vld [vmem:[%s1438_s14 + $0x3b0] sm:$0xff]  ;;  %v534_v63 = vld [vmem:[%s1438_s14 + $0x3b8] sm:$0xff] }
  0x2e   : > { %527 = vst [vmem:[%s1446_s15 + $0x1d8] sm:$0xff] %v526_v59  ;;  %529 = vst [vmem:[%s1446_s15 + $0x1e0] sm:$0xff] %v528_v60  ;;  %v536_v0 = vld [vmem:[%s1438_s14 + $0x400] sm:$0xff]  ;;  %v538_v1 = vld [vmem:[%s1438_s14 + $0x408] sm:$0xff] }
  0x2f   : > { %531 = vst [vmem:[%s1446_s15 + $0x1e8] sm:$0xff] %v530_v61  ;;  %533 = vst [vmem:[%s1446_s15 + $0x1f0] sm:$0xff] %v532_v62  ;;  %v540_v2 = vld [vmem:[%s1438_s14 + $0x410] sm:$0xff]  ;;  %v542_v3 = vld [vmem:[%s1438_s14 + $0x418] sm:$0xff] }
  0x30   : > { %535 = vst [vmem:[%s1446_s15 + $0x1f8] sm:$0xff] %v534_v63  ;;  %537 = vst [vmem:[%s1446_s15 + $0x200] sm:$0xff] %v536_v0  ;;  %v544_v4 = vld [vmem:[%s1438_s14 + $0x420] sm:$0xff]  ;;  %v546_v5 = vld [vmem:[%s1438_s14 + $0x428] sm:$0xff] }
  0x31   : > { %539 = vst [vmem:[%s1446_s15 + $0x208] sm:$0xff] %v538_v1  ;;  %541 = vst [vmem:[%s1446_s15 + $0x210] sm:$0xff] %v540_v2  ;;  %v548_v6 = vld [vmem:[%s1438_s14 + $0x430] sm:$0xff]  ;;  %v550_v7 = vld [vmem:[%s1438_s14 + $0x438] sm:$0xff] }
  0x32   : > { %543 = vst [vmem:[%s1446_s15 + $0x218] sm:$0xff] %v542_v3  ;;  %545 = vst [vmem:[%s1446_s15 + $0x220] sm:$0xff] %v544_v4 }
  0x33   : > { %547 = vst [vmem:[%s1446_s15 + $0x228] sm:$0xff] %v546_v5  ;;  %549 = vst [vmem:[%s1446_s15 + $0x230] sm:$0xff] %v548_v6 }
  0x34   : > { %551 = vst [vmem:[%s1446_s15 + $0x238] sm:$0xff] %v550_v7 }
  0x35 PF: > { %p1175_p5 = scmp.ge.s32.totalorder %s1362_s26, 1  ;;  %p556_p6 = scmp.lt.s32.totalorder %s1362_s26, 3 }
  0x37   : > { %p557_p7 = pnand %p1175_p5, %p556_p6 }
  0x38   : > { %s563_s20 = sand.u32 (!%p557_p7), 1, %s1354_s24   ;;  %s1176_s13 = sshll.u32 (!%p557_p7), %s1169_s27, 3 }
  0x39   : > { %560 = sbr.rel (%p557_p7) target bundleno = 328 (0x148), region = 82  ;;  %p596_p8 = scmp.lt.s32.totalorder (!%p557_p7), %s1176_s13, 15 }
  0x3a   : > { %s1315_s23 = smul.u32 (!%p557_p7), 576, %s563_s20 }
  0x3c   : > { %s1626_s18 = scalar_lea.vmem (!%p557_p7), [#allocation2], %s1315_s23 }
  0x3e   : > { %v929_v8 = vld [vmem:[%s1878_s4 + $0x18] sm:$0xff]  ;;  %v928_v9 = vld [vmem:[%s1878_s4 + $0x10] sm:$0xff]  ;;  %v927_v10 = vld [vmem:[%s1878_s4 + $0x8] sm:$0xff]  ;;  %vm930_vm0 = vcmask 261120   ;;  %s1886_s13 = smov (!%p596_p8, %s1176_s13), 15  ;;  %vm1098_vm1 = vcmask 392192  }
  0x3f   : > { %1286 = vmatprep.subr.mxu0 %v929_v8  ;;  %1306 = vmatprep.subr.mxu1 %v929_v8  ;;  %v1601_v11 = vld [vmem:[%s1875_s1] ss:$0 sm:$0xff]  ;;  %v1606_v12 = vld [vmem:[%s1875_s1 + $0x1] ss:$0 sm:$0xff]  ;;  %v1611_v13 = vld [vmem:[%s1875_s1 + $0x2] ss:$0 sm:$0xff] }
  0x40   : > { %1287 = vmatpush3.msra.mxu0 %v929_v8  ;;  %1310 = vmatpush3.msra.mxu1 %v929_v8  ;;  %v926_v14 = vld [vmem:[%s1878_s4] sm:$0xff]  ;;  %v1659_v34 = vld [vmem:[%s1875_s1 + $0x8] ss:$0 sm:$0xff] }
  0x41   : > { %1288 = vmatprep.subr.mxu0 %v928_v9  ;;  %1307 = vmatprep.subr.mxu1 %v928_v9  ;;  %v1619_v15 = vld [vmem:[%s1875_s1 + $0x3] ss:$0 sm:$0xff]  ;;  %v1624_v16 = vld [vmem:[%s1875_s1 + $0x4] ss:$0 sm:$0xff]  ;;  %v1634_v20 = vld [vmem:[%s1875_s1 + $0x5] ss:$0 sm:$0xff] }
  0x42   : > { %1289 = vmatpush3.msra.mxu0 %v928_v9  ;;  %1311 = vmatpush3.msra.mxu1 %v928_v9  ;;  %v601_v17 = vld [vmem:[%s1626_s18] sm:$0xff]  ;;  %v602_v57 = vld [vmem:[%s1626_s18 + $0x8] sm:$0xff] }
  0x43   : > { %v1179_v18 = vld [vmem:[%s1626_s18 + $0x40] sm:$0xff]  ;;  %1290 = vmatprep.subr.mxu0 %v927_v10  ;;  %1308 = vmatprep.subr.mxu1 %v927_v10  ;;  %v616_v21 = vmul.f32 %v1601_v11, %v601_v17  ;;  %v1180_v58 = vld [vmem:[%s1626_s18 + $0x48] sm:$0xff]  ;;  %v617_v61 = vmul.f32 %v1601_v11, %v602_v57 }
  0x44   : > { %v1189_v19 = vld [vmem:[%s1626_s18 + $0x80] sm:$0xff]  ;;  %v641_v22 = vmul.f32 %v1606_v12, %v1179_v18  ;;  %1291 = vmatpush3.msra.mxu0 %v927_v10  ;;  %1312 = vmatpush3.msra.mxu1 %v927_v10  ;;  %v642_v62 = vmul.f32 %v1606_v12, %v1180_v58  ;;  %v1190_v63 = vld [vmem:[%s1626_s18 + $0x88] sm:$0xff] }
  0x45   : > { %v674_v23 = vmul.f32 %v1611_v13, %v1189_v19  ;;  %v1199_v24 = vld [vmem:[%s1626_s18 + $0xc0] sm:$0xff]  ;;  %1292 = vmatprep.subr.mxu0 %v926_v14  ;;  %1309 = vmatprep.subr.mxu1 %v926_v14  ;;  %v1200_v0 = vld [vmem:[%s1626_s18 + $0xc8] sm:$0xff]  ;;  %v675_v5 = vmul.f32 %v1611_v13, %v1190_v63 }
  0x46   : > { %v1209_v25 = vld [vmem:[%s1626_s18 + $0x100] sm:$0xff]  ;;  %v649_v30 = vadd.f32 %v641_v22, %v616_v21  ;;  %v707_v31 = vmul.f32 %v1619_v15, %v1199_v24  ;;  %1293 = vmatpush3.msra.mxu0 %v926_v14  ;;  %1313 = vmatpush3.msra.mxu1 %v926_v14  ;;  %v1210_v1 = vld [vmem:[%s1626_s18 + $0x108] sm:$0xff]  ;;  %v650_v10 = vadd.f32 %v642_v62, %v617_v61 }
  0x47   : > { %v1644_v26 = vld [vmem:[%s1875_s1 + $0x6] ss:$0 sm:$0xff]  ;;  %v1653_v32 = vld [vmem:[%s1875_s1 + $0x7] ss:$0 sm:$0xff]  ;;  %v740_v35 = vmul.f32 %v1624_v16, %v1209_v25  ;;  %v1220_v6 = vld [vmem:[%s1626_s18 + $0x148] sm:$0xff]  ;;  %v708_v14 = vmul.f32 %v1619_v15, %v1200_v0  ;;  %v741_v17 = vmul.f32 %v1624_v16, %v1210_v1 }
  0x48   : > { %v1219_v27 = vld [vmem:[%s1626_s18 + $0x140] sm:$0xff]  ;;  %v682_v38 = vadd.f32 %v674_v23, %v649_v30  ;;  %v1230_v7 = vld [vmem:[%s1626_s18 + $0x188] sm:$0xff]  ;;  %v774_v24 = vmul.f32 %v1634_v20, %v1220_v6  ;;  %v683_v30 = vadd.f32 %v675_v5, %v650_v10  ;;  %v1221_v5 = vld [vmem:[%s1626_s18 + $0x150] sm:$0xff] }
  0x49   : > { %v1229_v28 = vld [vmem:[%s1626_s18 + $0x180] sm:$0xff]  ;;  %v773_v39 = vmul.f32 %v1634_v20, %v1219_v27  ;;  %v1240_v8 = vld [vmem:[%s1626_s18 + $0x1c8] sm:$0xff]  ;;  %v807_v25 = vmul.f32 %v1644_v26, %v1230_v7 }
  0x4a   : > { %v1239_v29 = vld [vmem:[%s1626_s18 + $0x1c0] sm:$0xff]  ;;  %v806_v45 = vmul.f32 %v1644_v26, %v1229_v28  ;;  %v715_v52 = vadd.f32 %v707_v31, %v682_v38  ;;  %v1250_v18 = vld [vmem:[%s1626_s18 + $0x208] sm:$0xff] }
  0x4b   : > { %v1249_v33 = vld [vmem:[%s1626_s18 + $0x200] sm:$0xff]  ;;  %v839_v46 = vmul.f32 %v1653_v32, %v1239_v29  ;;  %v606_v19 = vld [vmem:[%s1626_s18 + $0x28] sm:$0xff] }
  0x4c   : > { %v605_v36 = vld [vmem:[%s1626_s18 + $0x20] sm:$0xff]  ;;  %v1673_v47 = vmul.f32 %v1659_v34, %v1249_v33  ;;  %v748_v2 = vadd.f32 %v740_v35, %v715_v52  ;;  %v1184_v21 = vld [vmem:[%s1626_s18 + $0x68] sm:$0xff]  ;;  %v621_v31 = vmul.f32 %v1601_v11, %v606_v19  ;;  %v1191_v52 = vld [vmem:[%s1626_s18 + $0x90] sm:$0xff] }
  0x4d   : > { %v1183_v37 = vld [vmem:[%s1626_s18 + $0x60] sm:$0xff]  ;;  %v620_v40 = vmul.f32 %v1601_v11, %v605_v36  ;;  %v1194_v27 = vld [vmem:[%s1626_s18 + $0xa8] sm:$0xff]  ;;  %v646_v33 = vmul.f32 %v1606_v12, %v1184_v21 }
  0x4e   : > { %v645_v41 = vmul.f32 %v1606_v12, %v1183_v37  ;;  %v1193_v42 = vld [vmem:[%s1626_s18 + $0xa0] sm:$0xff]  ;;  %v781_v22 = vadd.f32 %v773_v39, %v748_v2  ;;  %v1204_v28 = vld [vmem:[%s1626_s18 + $0xe8] sm:$0xff]  ;;  %v679_v35 = vmul.f32 %v1611_v13, %v1194_v27 }
  0x4f   : > { %v1203_v43 = vld [vmem:[%s1626_s18 + $0xe0] sm:$0xff]  ;;  %v678_v48 = vmul.f32 %v1611_v13, %v1193_v42  ;;  %v1214_v29 = vld [vmem:[%s1626_s18 + $0x128] sm:$0xff]  ;;  %v603_v42 = vld [vmem:[%s1626_s18 + $0x10] sm:$0xff] }
  0x50   : > { %v1213_v44 = vld [vmem:[%s1626_s18 + $0x120] sm:$0xff]  ;;  %v653_v53 = vadd.f32 %v645_v41, %v620_v40  ;;  %v711_v54 = vmul.f32 %v1619_v15, %v1203_v43  ;;  %v1224_v36 = vld [vmem:[%s1626_s18 + $0x168] sm:$0xff]  ;;  %v814_v38 = vadd.f32 %v806_v45, %v781_v22  ;;  %v840_v40 = vmul.f32 %v1653_v32, %v1240_v8  ;;  %v1181_v43 = vld [vmem:[%s1626_s18 + $0x50] sm:$0xff] }
  0x51   : > { %v1223_v49 = vld [vmem:[%s1626_s18 + $0x160] sm:$0xff]  ;;  %v744_v55 = vmul.f32 %v1624_v16, %v1213_v44  ;;  %v1234_v37 = vld [vmem:[%s1626_s18 + $0x1a8] sm:$0xff]  ;;  %v873_v41 = vmul.f32 %v1659_v34, %v1250_v18  ;;  %v716_v44 = vadd.f32 %v708_v14, %v683_v30  ;;  %v618_v63 = vmul.f32 %v1601_v11, %v603_v42  ;;  %v1185_v22 = vld [vmem:[%s1626_s18 + $0x70] sm:$0xff] }
  0x52   : > { %v1233_v50 = vld [vmem:[%s1626_s18 + $0x1a0] sm:$0xff]  ;;  %v777_v59 = vmul.f32 %v1634_v20, %v1223_v49  ;;  %v686_v3 = vadd.f32 %v678_v48, %v653_v53  ;;  %v654_v48 = vadd.f32 %v646_v33, %v621_v31  ;;  %v712_v49 = vmul.f32 %v1619_v15, %v1204_v28  ;;  %v1254_v62 = vld [vmem:[%s1626_s18 + $0x228] sm:$0xff]  ;;  %v1205_v30 = vld [vmem:[%s1626_s18 + $0xf0] sm:$0xff] }
  0x53   : > { %v1243_v51 = vld [vmem:[%s1626_s18 + $0x1e0] sm:$0xff]  ;;  %v810_v60 = vmul.f32 %v1644_v26, %v1233_v50  ;;  %v745_v50 = vmul.f32 %v1624_v16, %v1214_v29  ;;  %v847_v45 = vadd.f32 %v839_v46, %v814_v38  ;;  %v749_v58 = vadd.f32 %v741_v17, %v716_v44  ;;  %v607_v17 = vld [vmem:[%s1626_s18 + $0x30] sm:$0xff] }
  0x54   : > { %v1253_v56 = vld [vmem:[%s1626_s18 + $0x220] sm:$0xff]  ;;  %v1692_v4 = vmul.f32 %v1653_v32, %v1243_v51  ;;  %v719_v23 = vadd.f32 %v711_v54, %v686_v3  ;;  %v1244_v51 = vld [vmem:[%s1626_s18 + $0x1e8] sm:$0xff]  ;;  %v778_v54 = vmul.f32 %v1634_v20, %v1224_v36  ;;  %v687_v61 = vadd.f32 %v679_v35, %v654_v48  ;;  %v1195_v29 = vld [vmem:[%s1626_s18 + $0xb0] sm:$0xff] }
  0x55   : > { %v1699_v9 = vmul.f32 %v1659_v34, %v1253_v56  ;;  %v1201_v56 = vld [vmem:[%s1626_s18 + $0xd0] sm:$0xff]  ;;  %v1730_v57 = vld [vmem:[%s1876_s2] ss:$0 sm:$0xff]  ;;  %v643_v46 = vmul.f32 %v1606_v12, %v1181_v43  ;;  %v880_v0 = vadd.f32 %v1673_v47, %v847_v45  ;;  %v844_v2 = vmul.f32 %v1653_v32, %v1244_v51 }
  0x56   : > { %v752_v39 = vadd.f32 %v744_v55, %v719_v23  ;;  %v811_v55 = vmul.f32 %v1644_v26, %v1234_v37  ;;  %v676_v3 = vmul.f32 %v1611_v13, %v1191_v52  ;;  %v1743_v6 = vld [vmem:[%s1877_s3] ss:$0 sm:$0xff]  ;;  %v782_v7 = vadd.f32 %v774_v24, %v749_v58  ;;  %v1231_v47 = vld [vmem:[%s1626_s18 + $0x190] sm:$0xff] }
  0x57   : > { %v720_v8 = vadd.f32 %v712_v49, %v687_v61  ;;  %v651_v10 = vadd.f32 %v643_v46, %v618_v63  ;;  %v709_v14 = vmul.f32 %v1619_v15, %v1201_v56  ;;  %v877_v19 = vmul.f32 %v1659_v34, %v1254_v62  ;;  %v1241_v38 = vld [vmem:[%s1626_s18 + $0x1d0] sm:$0xff]  ;;  %v1182_v46 = vld [vmem:[%s1626_s18 + $0x58] sm:$0xff] }
  0x58   : > { %v785_v53 = vadd.f32 %v777_v59, %v752_v39  ;;  %v1211_v59 = vld [vmem:[%s1626_s18 + $0x110] sm:$0xff]  ;;  %v815_v23 = vadd.f32 %v807_v25, %v782_v7  ;;  %v775_v28 = vmul.f32 %v1634_v20, %v1221_v5  ;;  %v622_v35 = vmul.f32 %v1601_v11, %v607_v17 }
  0x59   : > { %v742_v21 = vmul.f32 %v1624_v16, %v1211_v59  ;;  %v753_v24 = vadd.f32 %v745_v50, %v720_v8  ;;  %v684_v27 = vadd.f32 %v676_v3, %v651_v10  ;;  %v647_v39 = vmul.f32 %v1606_v12, %v1185_v22  ;;  %v1215_v42 = vld [vmem:[%s1626_s18 + $0x130] sm:$0xff]  ;;  %v1192_v59 = vld [vmem:[%s1626_s18 + $0x98] sm:$0xff] }
  0x5a   : > { %v818_v1 = vadd.f32 %v810_v60, %v785_v53  ;;  %v895_v60 = vmul.f32 %v1730_v57, %v880_v0  ;;  %v848_v36 = vadd.f32 %v840_v40, %v815_v23  ;;  %v680_v48 = vmul.f32 %v1611_v13, %v1195_v29  ;;  %v1251_v51 = vld [vmem:[%s1626_s18 + $0x210] sm:$0xff]  ;;  %v604_v53 = vld [vmem:[%s1626_s18 + $0x18] sm:$0xff] }
  0x5b   : > { %v786_v37 = vadd.f32 %v778_v54, %v753_v24  ;;  %v717_v25 = vadd.f32 %v709_v14, %v684_v27  ;;  %v655_v52 = vadd.f32 %v647_v39, %v622_v35  ;;  %v1225_v45 = vld [vmem:[%s1626_s18 + $0x170] sm:$0xff]  ;;  %v841_v56 = vmul.f32 %v1653_v32, %v1241_v38  ;;  %v608_v27 = vld [vmem:[%s1626_s18 + $0x38] sm:$0xff] }
  0x5c   : > { %v851_v18 = vadd.f32 %v1692_v4, %v818_v1  ;;  %v910_v31 = vadd.f32 %v1743_v6, %v895_v60  ;;  %v808_v4 = vmul.f32 %v1644_v26, %v1231_v47  ;;  %v881_v49 = vadd.f32 %v873_v41, %v848_v36  ;;  %v1235_v63 = vld [vmem:[%s1626_s18 + $0x1b0] sm:$0xff]  ;;  %v1202_v47 = vld [vmem:[%s1626_s18 + $0xd8] sm:$0xff] }
  0x5d   : > { %v819_v50 = vadd.f32 %v811_v55, %v786_v37  ;;  %v750_v40 = vadd.f32 %v742_v21, %v717_v25  ;;  %v746_v58 = vmul.f32 %v1624_v16, %v1215_v42  ;;  %v688_v62 = vadd.f32 %v680_v48, %v655_v52  ;;  %v1245_v14 = vld [vmem:[%s1626_s18 + $0x1f0] sm:$0xff]  ;;  %v1212_v21 = vld [vmem:[%s1626_s18 + $0x118] sm:$0xff] }
  0x5e   : > { %v884_v33 = vadd.f32 %v1699_v9, %v851_v18  ;;  %v918_v43 = vmax.f32 %v910_v31, 0.0  ;;  %v713_v9 = vmul.f32 %v1619_v15, %v1205_v30  ;;  %v896_v61 = vmul.f32 %v1730_v57, %v881_v49  ;;  %v1196_v29 = vld [vmem:[%s1626_s18 + $0xb8] sm:$0xff]  ;;  %v1255_v31 = vld [vmem:[%s1626_s18 + $0x230] sm:$0xff] }
  0x5f   : > { %v852_v41 = vadd.f32 %v844_v2, %v819_v50  ;;  %v783_v55 = vadd.f32 %v775_v28, %v750_v40  ;;  %v874_v1 = vmul.f32 %v1659_v34, %v1251_v51  ;;  %v779_v3 = vmul.f32 %v1634_v20, %v1225_v45  ;;  %v1186_v28 = vld [vmem:[%s1626_s18 + $0x78] sm:$0xff] }
  0x60   : > { %v899_v44 = vmul.f32 %v1730_v57, %v884_v33  ;;  %1294 = vmatprep.mubr.msk.f32.mxu0 %vm930_vm0, %v918_v43  ;;  %v619_v5 = vmul.f32 %v1601_v11, %v604_v53  ;;  %v911_v7 = vadd.f32 %v1743_v6, %v896_v61  ;;  %v721_v10 = vadd.f32 %v713_v9, %v688_v62  ;;  %v1222_v38 = vld [vmem:[%s1626_s18 + $0x158] sm:$0xff] }
  0x61   : > { %v885_v8 = vadd.f32 %v877_v19, %v852_v41  ;;  %v816_v2 = vadd.f32 %v808_v4, %v783_v55  ;;  %v812_v17 = vmul.f32 %v1644_v26, %v1235_v63  ;;  %v644_v60 = vmul.f32 %v1606_v12, %v1182_v46  ;;  %v1206_v39 = vld [vmem:[%s1626_s18 + $0xf8] sm:$0xff] }
  0x62   : > { %v914_v54 = vadd.f32 %v1743_v6, %v899_v44  ;;  %v677_v18 = vmul.f32 %v1611_v13, %v1192_v59  ;;  %v919_v22 = vmax.f32 %v911_v7, 0.0  ;;  %v754_v24 = vadd.f32 %v746_v58, %v721_v10  ;;  %v1232_v51 = vld [vmem:[%s1626_s18 + $0x198] sm:$0xff] }
  0x63   : > { %v900_v23 = vmul.f32 %v1730_v57, %v885_v8  ;;  %v849_v19 = vadd.f32 %v841_v56, %v816_v2  ;;  %v845_v30 = vmul.f32 %v1653_v32, %v1245_v14  ;;  %v652_v33 = vadd.f32 %v644_v60, %v619_v5  ;;  %v1216_v52 = vld [vmem:[%s1626_s18 + $0x138] sm:$0xff] }
  0x64   : > { %v922_v0 = vmax.f32 %v914_v54, 0.0  ;;  %v710_v4 = vmul.f32 %v1619_v15, %v1202_v47  ;;  %1295 = vmatmul.mubr.msk.f32.vlgmr.msra.gmra.mxu0 %vm930_vm0, %v919_v22  ;;  %v787_v37 = vadd.f32 %v779_v3, %v754_v24  ;;  %v743_v25 = vmul.f32 %v1624_v16, %v1212_v21  ;;  %v1242_v56 = vld [vmem:[%s1626_s18 + $0x1d8] sm:$0xff] }
  0x65   : > { %v915_v35 = vadd.f32 %v1743_v6, %v900_v23  ;;  %v882_v36 = vadd.f32 %v874_v1, %v849_v19  ;;  %v685_v42 = vadd.f32 %v677_v18, %v652_v33  ;;  %v623_v43 = vmul.f32 %v1601_v11, %v608_v27  ;;  %v1226_v58 = vld [vmem:[%s1626_s18 + $0x178] sm:$0xff] }
  0x66   : > { %1300 = vmatprep.mubr.msk.f32.mxu1 %vm930_vm0, %v922_v0  ;;  %v648_v44 = vmul.f32 %v1606_v12, %v1186_v28  ;;  %v681_v48 = vmul.f32 %v1611_v13, %v1196_v29  ;;  %v820_v50 = vadd.f32 %v812_v17, %v787_v37  ;;  %v878_v40 = vmul.f32 %v1659_v34, %v1255_v31  ;;  %v1252_v59 = vld [vmem:[%s1626_s18 + $0x218] sm:$0xff] }
  0x67   : > { %v923_v9 = vmax.f32 %v915_v35, 0.0  ;;  %v897_v49 = vmul.f32 %v1730_v57, %v882_v36  ;;  %v718_v45 = vadd.f32 %v710_v4, %v685_v42  ;;  %v776_v53 = vmul.f32 %v1634_v20, %v1222_v38  ;;  %v1236_v0 = vld [vmem:[%s1626_s18 + $0x1b8] sm:$0xff] }
  0x68   : > { %v656_v11 = vadd.f32 %v648_v44, %v623_v43  ;;  %v714_v54 = vmul.f32 %v1619_v15, %v1206_v39  ;;  %v853_v13 = vadd.f32 %v845_v30, %v820_v50  ;;  %v809_v41 = vmul.f32 %v1644_v26, %v1232_v51  ;;  %v1246_v8 = vld [vmem:[%s1626_s18 + $0x1f8] sm:$0xff] }
  0x69   : > { %1301 = vmatmul.mubr.msk.f32.vlgmr.msra.gmra.mxu1 %vm930_vm0, %v923_v9  ;;  %v912_v12 = vadd.f32 %v1743_v6, %v897_v49  ;;  %v751_v61 = vadd.f32 %v743_v25, %v718_v45  ;;  %v747_v62 = vmul.f32 %v1624_v16, %v1216_v52  ;;  %v842_v1 = vmul.f32 %v1653_v32, %v1242_v56  ;;  %v1256_v17 = vld [vmem:[%s1626_s18 + $0x238] sm:$0xff]  ;;  %s1177_s18 = sshll.u32 %s1886_s13, 3 }
  0x6a   : > { %v689_v55 = vadd.f32 %v681_v48, %v656_v11  ;;  %v886_v46 = vadd.f32 %v878_v40, %v853_v13  ;;  %v780_v5 = vmul.f32 %v1634_v20, %v1226_v58  ;;  %v875_v10 = vmul.f32 %v1659_v34, %v1252_v59  ;;  %s1846_s26 = scalar_lea.vmem %s1881_s7, %s1177_s18 }
  0x6b   : > { %v920_v63 = vmax.f32 %v912_v12, 0.0  ;;  %v784_v15 = vadd.f32 %v776_v53, %v751_v61  ;;  %v813_v14 = vmul.f32 %v1644_v26, %v1236_v0  ;;  %v846_v21 = vmul.f32 %v1653_v32, %v1246_v8 }
  0x6c   : > { %v722_v3 = vadd.f32 %v714_v54, %v689_v55  ;;  %v901_v7 = vmul.f32 %v1730_v57, %v886_v46  ;;  %v879_v19 = vmul.f32 %v1659_v34, %v1256_v17  ;;  %v1269_v34 = vld [vmem:[%s1879_s5] ss:$0 sm:$0xff] }
  0x6d   : > { %1297 = vmatprep.mubr.msk.f32.mxu0 %vm930_vm0, %v920_v63  ;;  %v817_v2 = vadd.f32 %v809_v41, %v784_v15 }
  0x6e   : > { %v755_v16 = vadd.f32 %v747_v62, %v722_v3  ;;  %v916_v47 = vadd.f32 %v1743_v6, %v901_v7 }
  0x6f   : > { %v850_v60 = vadd.f32 %v842_v1, %v817_v2 }
  0x70   : > { %v788_v18 = vadd.f32 %v780_v5, %v755_v16  ;;  %v924_v20 = vmax.f32 %v916_v47, 0.0 }
  0x71   : > { %v883_v22 = vadd.f32 %v875_v10, %v850_v60 }
  0x72   : > { %v821_v23 = vadd.f32 %v813_v14, %v788_v18  ;;  %1303 = vmatprep.mubr.msk.f32.mxu1 %vm930_vm0, %v924_v20 }
  0x73   : > { %v898_v24 = vmul.f32 %v1730_v57, %v883_v22 }
  0x74   : > { %v854_v27 = vadd.f32 %v846_v21, %v821_v23 }
  0x75   : > { %v913_v26 = vadd.f32 %v1743_v6, %v898_v24 }
  0x76   : > { %v887_v28 = vadd.f32 %v879_v19, %v854_v27 }
  0x77   : > { %v921_v29 = vmax.f32 %v913_v26, 0.0 }
  0x78   : > { %v902_v30 = vmul.f32 %v1730_v57, %v887_v28  ;;  %v1270_v57 = vld [vmem:[%s1880_s6] ss:$0 sm:$0xff] }
  0x79   : > { %1298 = vmatmul.mubr.msk.f32.gmra.mxu0 %vm930_vm0, %v921_v29 }
  0x7a   : > { %v917_v32 = vadd.f32 %v1743_v6, %v902_v30 }
  0x7c   : > { %v925_v31 = vmax.f32 %v917_v32, 0.0 }
  0x7e   : > { %1304 = vmatmul.mubr.msk.f32.gmra.mxu1 %vm930_vm0, %v925_v31 }
 0x124   : > { %v1296_v33 = vpop.f32.mrf.mxu0 }
 0x125   : > { %v1068_v4 = vmul.f32 %v1296_v33, %v1269_v34 }
 0x126   : > { %v1021_v35 = vpop.f32.mrf.mxu0 }
 0x127   : > { %v1083_v6 = vadd.f32 %v1270_v57, %v1068_v4  ;;  %v1067_v36 = vmul.f32 %v1269_v34, %v1021_v35 }
 0x129   : > { %v1302_v37 = vpop.f32.mrf.mxu1  ;;  %v1091_v25 = vmax.f32 %v1083_v6, 0.0  ;;  %v1082_v39 = vadd.f32 %v1270_v57, %v1067_v36 }
 0x12a   : > { %v1072_v38 = vmul.f32 %v1302_v37, %v1269_v34 }
 0x12b   : > { %v1041_v42 = vpop.f32.mrf.mxu1  ;;  %1100 = vst.msk [vmem:[%s1846_s26 + $0x8] sm:$0xff] %vm1098_vm1, %v1091_v25  ;;  %v1090_v44 = vmax.f32 %v1082_v39, 0.0 }
 0x12c   : > { %v1087_v43 = vadd.f32 %v1270_v57, %v1072_v38  ;;  %v1071_v48 = vmul.f32 %v1269_v34, %v1041_v42 }
 0x12d   : > { %1099 = vst.msk [vmem:[%s1846_s26] sm:$0xff] %vm1098_vm1, %v1090_v44 }
 0x12e   : > { %v1095_v9 = vmax.f32 %v1087_v43, 0.0  ;;  %v1086_v49 = vadd.f32 %v1270_v57, %v1071_v48 }
 0x130   : > { %1104 = vst.msk [vmem:[%s1846_s26 + $0x28] sm:$0xff] %vm1098_vm1, %v1095_v9  ;;  %v1094_v50 = vmax.f32 %v1086_v49, 0.0 }
 0x132   : > { %1103 = vst.msk [vmem:[%s1846_s26 + $0x20] sm:$0xff] %vm1098_vm1, %v1094_v50 }
 0x139   : > { %v1299_v40 = vpop.f32.mrf.mxu0 }
 0x13a   : > { %v1070_v51 = vmul.f32 %v1299_v40, %v1269_v34 }
 0x13b   : > { %v1031_v52 = vpop.f32.mrf.mxu0 }
 0x13c   : > { %v1085_v45 = vadd.f32 %v1270_v57, %v1070_v51  ;;  %v1069_v53 = vmul.f32 %v1269_v34, %v1031_v52 }
 0x13e   : > { %v1305_v11 = vpop.f32.mrf.mxu1  ;;  %v1093_v54 = vmax.f32 %v1085_v45, 0.0  ;;  %v1084_v13 = vadd.f32 %v1270_v57, %v1069_v53 }
 0x13f   : > { %v1074_v12 = vmul.f32 %v1305_v11, %v1269_v34 }
 0x140   : > { %v1051_v56 = vpop.f32.mrf.mxu1  ;;  %1102 = vst.msk [vmem:[%s1846_s26 + $0x18] sm:$0xff] %vm1098_vm1, %v1093_v54  ;;  %v1092_v61 = vmax.f32 %v1084_v13, 0.0 }
 0x141   : > { %v1089_v58 = vadd.f32 %v1270_v57, %v1074_v12  ;;  %v1073_v41 = vmul.f32 %v1269_v34, %v1051_v56 }
 0x142   : > { %1101 = vst.msk [vmem:[%s1846_s26 + $0x10] sm:$0xff] %vm1098_vm1, %v1092_v61 }
 0x143   : > { %v1097_v55 = vmax.f32 %v1089_v58, 0.0  ;;  %v1088_v62 = vadd.f32 %v1270_v57, %v1073_v41 }
 0x145   : > { %1106 = vst.msk [vmem:[%s1846_s26 + $0x38] sm:$0xff] %vm1098_vm1, %v1097_v55  ;;  %v1096_v63 = vmax.f32 %v1088_v62, 0.0 }
 0x147   : > { %1105 = vst.msk [vmem:[%s1846_s26 + $0x30] sm:$0xff] %vm1098_vm1, %v1096_v63 }
 0x148 PF: > { %p14_p9 = scmp.ge.s32.totalorder %s1421_s28, 4   ;;  %s1882_s24 = smov %s1358_s25 }
 0x149   : > { %s1883_s25 = smov %s1430_s8  ;;  %s1884_s26 = smov %s1421_s28 }
 0x14a   :  { %16 = sbr.rel (!%p14_p9) target bundleno = 2 (0x2), region = 137 }

// kernel: learning_to_downsample.3
= control target key start
LH: loop header
LB: loop body
LE: loop exit
PB: predicated region body
PF: predicated region fallthrough
CT: control target
= control target key end

     0   :  { %s949_s15 = smov 0   ;;  %s1191_s0 = inlined_call_operand.vmem [shape: f32[512,27], index: 0, kind: input, shape index: {}]   ;;  %s1192_s1 = inlined_call_operand.vmem [shape: f32[27,32], index: 1, kind: input, shape index: {}]   ;;  %s1193_s2 = inlined_call_operand.vmem [shape: f32[1,32], index: 2, kind: input, shape index: {}]   ;;  %s1194_s3 = inlined_call_operand.vmem [shape: f32[1,32], index: 3, kind: input, shape index: {}]   ;;  %s1195_s4 = inlined_call_operand.vmem [shape: f32[512,32], index: 4, kind: output, shape index: {}]  }
   0x1 LB: > { %s762_s16 = sadd.s32 4294967295, %s922_s15   ;;  %p766_p0 = scmp.ge.s32.totalorder %s922_s15, 1  ;;  %s922_s15 = sphi %s949_s15, %s14_s15  }
   0x2   : > { %p163_p1 = scmp.lt.s32.totalorder %s922_s15, 3 }
   0x4   : > { %p164_p2 = pnand %p766_p0, %p163_p1 }
   0x5   : > { %s767_s21 = sshll.u32 (!%p164_p2), %s762_s16, 5 }
   0x6   : > { %167 = sbr.rel (%p164_p2) target bundleno = 251 (0xfb), region = 36  ;;  %p190_p3 = scmp.lt.s32.totalorder (!%p164_p2), %s767_s21, 63 }
   0xb   : > { %v236_v0 = vld [vmem:[%s1192_s1 + $0x18] sm:$0x7]  ;;  %vm334_vm0 = vcmask 1042432   ;;  %v235_v1 = vld [vmem:[%s1192_s1 + $0x10] sm:$0xff]  ;;  %v234_v2 = vld [vmem:[%s1192_s1 + $0x8] sm:$0xff]  ;;  %s1197_s21 = smov (!%p190_p3, %s767_s21), 63 }
   0xc   : > { %844 = vmatprep.subr.msk.mxu0 %vm334_vm0, %v236_v0  ;;  %900 = vmatprep.subr.msk.mxu1 %vm334_vm0, %v236_v0  ;;  %v233_v3 = vld [vmem:[%s1192_s1] sm:$0xff]  ;;  %s768_s26 = sshll.u32 %s1197_s21, 3  ;;  %vm237_vm1 = vcmask 220160   ;;  %vm673_vm2 = vcmask 261120  }
   0xd   : > { %845 = vmatpush3.msk.msra.mxu0 %vm334_vm0, %v236_v0  ;;  %904 = vmatpush3.msk.msra.mxu1 %vm334_vm0, %v236_v0  ;;  %s977_s29 = scalar_lea.vmem %s1191_s0, %s768_s26  ;;  %v1046_v36 = vld [vmem:[%s1193_s2] ss:$0 sm:$0xff]  ;;  %s1064_s10 = scalar_lea.vmem %s1195_s4, %s768_s26 }
   0xe   : > { %846 = vmatprep.subr.mxu0 %v235_v1  ;;  %901 = vmatprep.subr.mxu1 %v235_v1  ;;  %v201_v4 = vld [vmem:[%s977_s29] sm:$0xff]  ;;  %v202_v6 = vld [vmem:[%s977_s29 + $0x8] sm:$0xff]  ;;  %v203_v8 = vld [vmem:[%s977_s29 + $0x10] sm:$0xff] }
   0xf   : > { %847 = vmatpush3.msra.mxu0 %v235_v1  ;;  %905 = vmatpush3.msra.mxu1 %v235_v1  ;;  %v217_v5 = vld [vmem:[%s977_s29 + $0x80] sm:$0xff]  ;;  %v218_v7 = vld [vmem:[%s977_s29 + $0x88] sm:$0xff]  ;;  %v219_v9 = vld [vmem:[%s977_s29 + $0x90] sm:$0xff] }
  0x10   : > { %848 = vmatprep.subr.mxu0 %v234_v2  ;;  %902 = vmatprep.subr.mxu1 %v234_v2  ;;  %v204_v10 = vld [vmem:[%s977_s29 + $0x18] sm:$0xff]  ;;  %v205_v12 = vld [vmem:[%s977_s29 + $0x20] sm:$0xff]  ;;  %v206_v14 = vld [vmem:[%s977_s29 + $0x28] sm:$0xff] }
  0x11   : > { %849 = vmatpush3.msra.mxu0 %v234_v2  ;;  %906 = vmatpush3.msra.mxu1 %v234_v2  ;;  %v220_v11 = vld [vmem:[%s977_s29 + $0x98] sm:$0xff]  ;;  %v221_v13 = vld [vmem:[%s977_s29 + $0xa0] sm:$0xff]  ;;  %v222_v15 = vld [vmem:[%s977_s29 + $0xa8] sm:$0xff] }
  0x12   : > { %850 = vmatprep.subr.mxu0 %v233_v3  ;;  %903 = vmatprep.subr.mxu1 %v233_v3  ;;  %v207_v16 = vld [vmem:[%s977_s29 + $0x30] sm:$0xff]  ;;  %v208_v18 = vld [vmem:[%s977_s29 + $0x38] sm:$0xff]  ;;  %v209_v20 = vld [vmem:[%s977_s29 + $0x40] sm:$0xff] }
  0x13   : > { %851 = vmatpush3.msra.mxu0 %v233_v3  ;;  %907 = vmatpush3.msra.mxu1 %v233_v3  ;;  %v223_v17 = vld [vmem:[%s977_s29 + $0xb0] sm:$0xff]  ;;  %v224_v19 = vld [vmem:[%s977_s29 + $0xb8] sm:$0xff]  ;;  %v225_v21 = vld [vmem:[%s977_s29 + $0xc0] sm:$0xff] }
  0x14   : > { %852 = vmatprep.mubr.msk.f32.mxu0 %vm237_vm1, %v201_v4  ;;  %876 = vmatprep.mubr.msk.f32.mxu1 %vm237_vm1, %v217_v5  ;;  %v210_v22 = vld [vmem:[%s977_s29 + $0x48] sm:$0xff]  ;;  %v211_v24 = vld [vmem:[%s977_s29 + $0x50] sm:$0xff]  ;;  %v212_v26 = vld [vmem:[%s977_s29 + $0x58] sm:$0xff] }
  0x15   : > { %853 = vmatmul.mubr.msk.f32.vlgmr.msra.gmra.mxu0 %vm237_vm1, %v202_v6  ;;  %877 = vmatmul.mubr.msk.f32.vlgmr.msra.gmra.mxu1 %vm237_vm1, %v218_v7  ;;  %v226_v23 = vld [vmem:[%s977_s29 + $0xc8] sm:$0xff]  ;;  %v227_v25 = vld [vmem:[%s977_s29 + $0xd0] sm:$0xff]  ;;  %v228_v27 = vld [vmem:[%s977_s29 + $0xd8] sm:$0xff] }
  0x16   : > { %855 = vmatprep.mubr.msk.f32.mxu0 %vm237_vm1, %v203_v8  ;;  %879 = vmatprep.mubr.msk.f32.mxu1 %vm237_vm1, %v219_v9  ;;  %v213_v28 = vld [vmem:[%s977_s29 + $0x60] sm:$0xff]  ;;  %v214_v30 = vld [vmem:[%s977_s29 + $0x68] sm:$0xff]  ;;  %v215_v32 = vld [vmem:[%s977_s29 + $0x70] sm:$0xff] }
  0x17   : > { %v229_v29 = vld [vmem:[%s977_s29 + $0xe0] sm:$0xff]  ;;  %v230_v31 = vld [vmem:[%s977_s29 + $0xe8] sm:$0xff]  ;;  %v231_v33 = vld [vmem:[%s977_s29 + $0xf0] sm:$0xff] }
  0x18   : > { %v216_v34 = vld [vmem:[%s977_s29 + $0x78] sm:$0xff]  ;;  %v1051_v38 = vld [vmem:[%s1194_s3] ss:$0 sm:$0xff] }
  0x19   : > { %856 = vmatmul.mubr.msk.f32.gmra.mxu0 %vm237_vm1, %v204_v10  ;;  %880 = vmatmul.mubr.msk.f32.gmra.mxu1 %vm237_vm1, %v220_v11  ;;  %v232_v35 = vld [vmem:[%s977_s29 + $0xf8] sm:$0xff] }
  0x1a   : > { %858 = vmatprep.mubr.msk.f32.mxu0 %vm237_vm1, %v205_v12  ;;  %882 = vmatprep.mubr.msk.f32.mxu1 %vm237_vm1, %v221_v13 }
  0x1d   : > { %859 = vmatmul.mubr.msk.f32.gmra.mxu0 %vm237_vm1, %v206_v14  ;;  %883 = vmatmul.mubr.msk.f32.gmra.mxu1 %vm237_vm1, %v222_v15 }
  0x1e   : > { %861 = vmatprep.mubr.msk.f32.mxu0 %vm237_vm1, %v207_v16  ;;  %885 = vmatprep.mubr.msk.f32.mxu1 %vm237_vm1, %v223_v17 }
  0x21   : > { %862 = vmatmul.mubr.msk.f32.gmra.mxu0 %vm237_vm1, %v208_v18  ;;  %886 = vmatmul.mubr.msk.f32.gmra.mxu1 %vm237_vm1, %v224_v19 }
  0x22   : > { %864 = vmatprep.mubr.msk.f32.mxu0 %vm237_vm1, %v209_v20  ;;  %888 = vmatprep.mubr.msk.f32.mxu1 %vm237_vm1, %v225_v21 }
  0x25   : > { %865 = vmatmul.mubr.msk.f32.gmra.mxu0 %vm237_vm1, %v210_v22  ;;  %889 = vmatmul.mubr.msk.f32.gmra.mxu1 %vm237_vm1, %v226_v23 }
  0x26   : > { %867 = vmatprep.mubr.msk.f32.mxu0 %vm237_vm1, %v211_v24  ;;  %891 = vmatprep.mubr.msk.f32.mxu1 %vm237_vm1, %v227_v25 }
  0x29   : > { %868 = vmatmul.mubr.msk.f32.gmra.mxu0 %vm237_vm1, %v212_v26  ;;  %892 = vmatmul.mubr.msk.f32.gmra.mxu1 %vm237_vm1, %v228_v27 }
  0x2a   : > { %870 = vmatprep.mubr.msk.f32.mxu0 %vm237_vm1, %v213_v28  ;;  %894 = vmatprep.mubr.msk.f32.mxu1 %vm237_vm1, %v229_v29 }
  0x2d   : > { %871 = vmatmul.mubr.msk.f32.gmra.mxu0 %vm237_vm1, %v214_v30  ;;  %895 = vmatmul.mubr.msk.f32.gmra.mxu1 %vm237_vm1, %v230_v31 }
  0x2e   : > { %873 = vmatprep.mubr.msk.f32.mxu0 %vm237_vm1, %v215_v32  ;;  %897 = vmatprep.mubr.msk.f32.mxu1 %vm237_vm1, %v231_v33 }
  0x31   : > { %874 = vmatmul.mubr.msk.f32.gmra.mxu0 %vm237_vm1, %v216_v34  ;;  %898 = vmatmul.mubr.msk.f32.gmra.mxu1 %vm237_vm1, %v232_v35 }
  0xd5   : > { %v854_v37 = vpop.f32.mrf.mxu0  ;;  %v878_v39 = vpop.f32.mrf.mxu1 }
  0xd6   : > { %v571_v40 = vmul.f32 %v854_v37, %v1046_v36  ;;  %v587_v41 = vmul.f32 %v878_v39, %v1046_v36 }
  0xd7   : > { %v404_v42 = vpop.f32.mrf.mxu0  ;;  %v484_v43 = vpop.f32.mrf.mxu1 }
  0xd8   : > { %v610_v44 = vadd.f32 %v1051_v38, %v571_v40  ;;  %v626_v45 = vadd.f32 %v1051_v38, %v587_v41  ;;  %v570_v46 = vmul.f32 %v1046_v36, %v404_v42  ;;  %v586_v47 = vmul.f32 %v1046_v36, %v484_v43 }
  0xd9   : > { %v857_v48 = vpop.f32.mrf.mxu0  ;;  %v881_v49 = vpop.f32.mrf.mxu1 }
  0xda   : > { %v642_v50 = vmax.f32 %v610_v44, 0.0  ;;  %v658_v51 = vmax.f32 %v626_v45, 0.0  ;;  %v609_v52 = vadd.f32 %v1051_v38, %v570_v46  ;;  %v625_v53 = vadd.f32 %v1051_v38, %v586_v47 }
  0xdb   : > { %v573_v54 = vmul.f32 %v857_v48, %v1046_v36  ;;  %v589_v55 = vmul.f32 %v881_v49, %v1046_v36  ;;  %v414_v56 = vpop.f32.mrf.mxu0  ;;  %v494_v57 = vpop.f32.mrf.mxu1 }
  0xdc   : > { %675 = vst.msk [vmem:[%s1064_s10 + $0x8] sm:$0xff] %vm673_vm2, %v642_v50  ;;  %691 = vst.msk [vmem:[%s1064_s10 + $0x88] sm:$0xff] %vm673_vm2, %v658_v51  ;;  %v641_v58 = vmax.f32 %v609_v52, 0.0  ;;  %v657_v59 = vmax.f32 %v625_v53, 0.0  ;;  %v572_v60 = vmul.f32 %v1046_v36, %v414_v56  ;;  %v588_v61 = vmul.f32 %v1046_v36, %v494_v57 }
  0xdd   : > { %v612_v62 = vadd.f32 %v1051_v38, %v573_v54  ;;  %v628_v63 = vadd.f32 %v1051_v38, %v589_v55  ;;  %v860_v0 = vpop.f32.mrf.mxu0  ;;  %v884_v1 = vpop.f32.mrf.mxu1 }
  0xde   : > { %674 = vst.msk [vmem:[%s1064_s10] sm:$0xff] %vm673_vm2, %v641_v58  ;;  %690 = vst.msk [vmem:[%s1064_s10 + $0x80] sm:$0xff] %vm673_vm2, %v657_v59  ;;  %v611_v2 = vadd.f32 %v1051_v38, %v572_v60  ;;  %v627_v3 = vadd.f32 %v1051_v38, %v588_v61  ;;  %v575_v4 = vmul.f32 %v860_v0, %v1046_v36 }
  0xdf   : > { %v591_v5 = vmul.f32 %v884_v1, %v1046_v36  ;;  %v644_v6 = vmax.f32 %v612_v62, 0.0  ;;  %v660_v7 = vmax.f32 %v628_v63, 0.0  ;;  %v424_v8 = vpop.f32.mrf.mxu0  ;;  %v504_v9 = vpop.f32.mrf.mxu1 }
  0xe0   : > { %v643_v10 = vmax.f32 %v611_v2, 0.0  ;;  %v659_v11 = vmax.f32 %v627_v3, 0.0  ;;  %v614_v12 = vadd.f32 %v1051_v38, %v575_v4  ;;  %v574_v14 = vmul.f32 %v1046_v36, %v424_v8 }
  0xe1   : > { %v630_v13 = vadd.f32 %v1051_v38, %v591_v5  ;;  %677 = vst.msk [vmem:[%s1064_s10 + $0x18] sm:$0xff] %vm673_vm2, %v644_v6  ;;  %693 = vst.msk [vmem:[%s1064_s10 + $0x98] sm:$0xff] %vm673_vm2, %v660_v7  ;;  %v590_v15 = vmul.f32 %v1046_v36, %v504_v9  ;;  %v863_v16 = vpop.f32.mrf.mxu0  ;;  %v887_v17 = vpop.f32.mrf.mxu1 }
  0xe2   : > { %676 = vst.msk [vmem:[%s1064_s10 + $0x10] sm:$0xff] %vm673_vm2, %v643_v10  ;;  %692 = vst.msk [vmem:[%s1064_s10 + $0x90] sm:$0xff] %vm673_vm2, %v659_v11  ;;  %v646_v18 = vmax.f32 %v614_v12, 0.0  ;;  %v577_v20 = vmul.f32 %v863_v16, %v1046_v36  ;;  %v593_v21 = vmul.f32 %v887_v17, %v1046_v36  ;;  %v613_v22 = vadd.f32 %v1051_v38, %v574_v14 }
  0xe3   : > { %v662_v19 = vmax.f32 %v630_v13, 0.0  ;;  %v629_v23 = vadd.f32 %v1051_v38, %v590_v15  ;;  %v434_v24 = vpop.f32.mrf.mxu0  ;;  %v514_v25 = vpop.f32.mrf.mxu1 }
  0xe4   : > { %679 = vst.msk [vmem:[%s1064_s10 + $0x28] sm:$0xff] %vm673_vm2, %v646_v18  ;;  %v616_v26 = vadd.f32 %v1051_v38, %v577_v20  ;;  %v632_v27 = vadd.f32 %v1051_v38, %v593_v21  ;;  %v576_v28 = vmul.f32 %v1046_v36, %v434_v24  ;;  %v592_v29 = vmul.f32 %v1046_v36, %v514_v25 }
  0xe5   : > { %695 = vst.msk [vmem:[%s1064_s10 + $0xa8] sm:$0xff] %vm673_vm2, %v662_v19  ;;  %v645_v30 = vmax.f32 %v613_v22, 0.0  ;;  %v661_v31 = vmax.f32 %v629_v23, 0.0  ;;  %v866_v32 = vpop.f32.mrf.mxu0  ;;  %v890_v33 = vpop.f32.mrf.mxu1 }
  0xe6   : > { %v648_v34 = vmax.f32 %v616_v26, 0.0  ;;  %v664_v35 = vmax.f32 %v632_v27, 0.0  ;;  %v615_v37 = vadd.f32 %v1051_v38, %v576_v28  ;;  %v631_v39 = vadd.f32 %v1051_v38, %v592_v29 }
  0xe7   : > { %678 = vst.msk [vmem:[%s1064_s10 + $0x20] sm:$0xff] %vm673_vm2, %v645_v30  ;;  %694 = vst.msk [vmem:[%s1064_s10 + $0xa0] sm:$0xff] %vm673_vm2, %v661_v31  ;;  %v579_v40 = vmul.f32 %v866_v32, %v1046_v36  ;;  %v595_v41 = vmul.f32 %v890_v33, %v1046_v36  ;;  %v444_v42 = vpop.f32.mrf.mxu0  ;;  %v524_v43 = vpop.f32.mrf.mxu1 }
  0xe8   : > { %681 = vst.msk [vmem:[%s1064_s10 + $0x38] sm:$0xff] %vm673_vm2, %v648_v34  ;;  %697 = vst.msk [vmem:[%s1064_s10 + $0xb8] sm:$0xff] %vm673_vm2, %v664_v35  ;;  %v647_v44 = vmax.f32 %v615_v37, 0.0  ;;  %v663_v45 = vmax.f32 %v631_v39, 0.0  ;;  %v578_v46 = vmul.f32 %v1046_v36, %v444_v42  ;;  %v594_v47 = vmul.f32 %v1046_v36, %v524_v43 }
  0xe9   : > { %v618_v48 = vadd.f32 %v1051_v38, %v579_v40  ;;  %v634_v49 = vadd.f32 %v1051_v38, %v595_v41  ;;  %v869_v50 = vpop.f32.mrf.mxu0  ;;  %v893_v51 = vpop.f32.mrf.mxu1 }
  0xea   : > { %680 = vst.msk [vmem:[%s1064_s10 + $0x30] sm:$0xff] %vm673_vm2, %v647_v44  ;;  %696 = vst.msk [vmem:[%s1064_s10 + $0xb0] sm:$0xff] %vm673_vm2, %v663_v45  ;;  %v617_v52 = vadd.f32 %v1051_v38, %v578_v46  ;;  %v633_v53 = vadd.f32 %v1051_v38, %v594_v47  ;;  %v581_v54 = vmul.f32 %v869_v50, %v1046_v36 }
  0xeb   : > { %v597_v55 = vmul.f32 %v893_v51, %v1046_v36  ;;  %v650_v56 = vmax.f32 %v618_v48, 0.0  ;;  %v666_v57 = vmax.f32 %v634_v49, 0.0  ;;  %v454_v58 = vpop.f32.mrf.mxu0  ;;  %v534_v59 = vpop.f32.mrf.mxu1 }
  0xec   : > { %v649_v60 = vmax.f32 %v617_v52, 0.0  ;;  %v665_v61 = vmax.f32 %v633_v53, 0.0  ;;  %v620_v62 = vadd.f32 %v1051_v38, %v581_v54  ;;  %v580_v0 = vmul.f32 %v1046_v36, %v454_v58 }
  0xed   : > { %v636_v63 = vadd.f32 %v1051_v38, %v597_v55  ;;  %683 = vst.msk [vmem:[%s1064_s10 + $0x48] sm:$0xff] %vm673_vm2, %v650_v56  ;;  %699 = vst.msk [vmem:[%s1064_s10 + $0xc8] sm:$0xff] %vm673_vm2, %v666_v57  ;;  %v596_v1 = vmul.f32 %v1046_v36, %v534_v59  ;;  %v872_v2 = vpop.f32.mrf.mxu0  ;;  %v896_v3 = vpop.f32.mrf.mxu1 }
  0xee   : > { %682 = vst.msk [vmem:[%s1064_s10 + $0x40] sm:$0xff] %vm673_vm2, %v649_v60  ;;  %698 = vst.msk [vmem:[%s1064_s10 + $0xc0] sm:$0xff] %vm673_vm2, %v665_v61  ;;  %v652_v4 = vmax.f32 %v620_v62, 0.0  ;;  %v583_v6 = vmul.f32 %v872_v2, %v1046_v36  ;;  %v599_v7 = vmul.f32 %v896_v3, %v1046_v36  ;;  %v619_v8 = vadd.f32 %v1051_v38, %v580_v0 }
  0xef   : > { %v668_v5 = vmax.f32 %v636_v63, 0.0  ;;  %v635_v9 = vadd.f32 %v1051_v38, %v596_v1  ;;  %v464_v10 = vpop.f32.mrf.mxu0  ;;  %v544_v11 = vpop.f32.mrf.mxu1 }
  0xf0   : > { %685 = vst.msk [vmem:[%s1064_s10 + $0x58] sm:$0xff] %vm673_vm2, %v652_v4  ;;  %v622_v12 = vadd.f32 %v1051_v38, %v583_v6  ;;  %v638_v13 = vadd.f32 %v1051_v38, %v599_v7  ;;  %v582_v14 = vmul.f32 %v1046_v36, %v464_v10  ;;  %v598_v15 = vmul.f32 %v1046_v36, %v544_v11 }
  0xf1   : > { %701 = vst.msk [vmem:[%s1064_s10 + $0xd8] sm:$0xff] %vm673_vm2, %v668_v5  ;;  %v651_v16 = vmax.f32 %v619_v8, 0.0  ;;  %v667_v17 = vmax.f32 %v635_v9, 0.0  ;;  %v875_v18 = vpop.f32.mrf.mxu0  ;;  %v899_v19 = vpop.f32.mrf.mxu1 }
  0xf2   : > { %v654_v20 = vmax.f32 %v622_v12, 0.0  ;;  %v670_v21 = vmax.f32 %v638_v13, 0.0  ;;  %v621_v22 = vadd.f32 %v1051_v38, %v582_v14  ;;  %v637_v23 = vadd.f32 %v1051_v38, %v598_v15 }
  0xf3   : > { %684 = vst.msk [vmem:[%s1064_s10 + $0x50] sm:$0xff] %vm673_vm2, %v651_v16  ;;  %700 = vst.msk [vmem:[%s1064_s10 + $0xd0] sm:$0xff] %vm673_vm2, %v667_v17  ;;  %v585_v24 = vmul.f32 %v875_v18, %v1046_v36  ;;  %v601_v25 = vmul.f32 %v899_v19, %v1046_v36  ;;  %v474_v26 = vpop.f32.mrf.mxu0  ;;  %v554_v27 = vpop.f32.mrf.mxu1 }
  0xf4   : > { %687 = vst.msk [vmem:[%s1064_s10 + $0x68] sm:$0xff] %vm673_vm2, %v654_v20  ;;  %703 = vst.msk [vmem:[%s1064_s10 + $0xe8] sm:$0xff] %vm673_vm2, %v670_v21  ;;  %v653_v28 = vmax.f32 %v621_v22, 0.0  ;;  %v669_v29 = vmax.f32 %v637_v23, 0.0  ;;  %v584_v30 = vmul.f32 %v1046_v36, %v474_v26  ;;  %v600_v31 = vmul.f32 %v1046_v36, %v554_v27 }
  0xf5   : > { %v624_v32 = vadd.f32 %v1051_v38, %v585_v24  ;;  %v640_v33 = vadd.f32 %v1051_v38, %v601_v25 }
  0xf6   : > { %686 = vst.msk [vmem:[%s1064_s10 + $0x60] sm:$0xff] %vm673_vm2, %v653_v28  ;;  %702 = vst.msk [vmem:[%s1064_s10 + $0xe0] sm:$0xff] %vm673_vm2, %v669_v29  ;;  %v623_v34 = vadd.f32 %v1051_v38, %v584_v30  ;;  %v639_v35 = vadd.f32 %v1051_v38, %v600_v31 }
  0xf7   : > { %v656_v37 = vmax.f32 %v624_v32, 0.0  ;;  %v672_v39 = vmax.f32 %v640_v33, 0.0 }
  0xf8   : > { %v655_v40 = vmax.f32 %v623_v34, 0.0  ;;  %v671_v41 = vmax.f32 %v639_v35, 0.0 }
  0xf9   : > { %689 = vst.msk [vmem:[%s1064_s10 + $0x78] sm:$0xff] %vm673_vm2, %v656_v37  ;;  %705 = vst.msk [vmem:[%s1064_s10 + $0xf8] sm:$0xff] %vm673_vm2, %v672_v39 }
  0xfa   : > { %688 = vst.msk [vmem:[%s1064_s10 + $0x70] sm:$0xff] %vm673_vm2, %v655_v40  ;;  %704 = vst.msk [vmem:[%s1064_s10 + $0xf0] sm:$0xff] %vm673_vm2, %v671_v41 }
  0xfb PF: > { %s14_s15 = sadd.s32 1, %s922_s15  }
  0xfc   : > { %p11_p4 = scmp.ge.s32.totalorder %s14_s15, 4  }
  0xfe   :  { %13 = sbr.rel (!%p11_p4) target bundleno = 1 (0x1), region = 66 }

// kernel: learning_to_downsample.5
= control target key start
LH: loop header
LB: loop body
LE: loop exit
PB: predicated region body
PF: predicated region fallthrough
CT: control target
= control target key end

     0   :  { %12 = vsyncpa [#allocation4], 0  ;;  %s1159_s0 = inlined_call_operand.vmem [shape: f32[9,32,48], index: 0, kind: input, shape index: {}]   ;;  %s1160_s1 = inlined_call_operand.vmem [shape: f32[9,1,48], index: 1, kind: input, shape index: {}]   ;;  %s1161_s2 = inlined_call_operand.vmem [shape: f32[1,48], index: 2, kind: input, shape index: {}]   ;;  %s1162_s3 = inlined_call_operand.vmem [shape: f32[1,48], index: 3, kind: input, shape index: {}]   ;;  %s1163_s4 = inlined_call_operand.vmem [shape: f32[48,64], index: 4, kind: input, shape index: {}]   ;;  %s1164_s5 = inlined_call_operand.vmem [shape: f32[1,64], index: 5, kind: input, shape index: {}]   ;;  %s1165_s6 = inlined_call_operand.vmem [shape: f32[1,64], index: 6, kind: input, shape index: {}]   ;;  %s1166_s7 = inlined_call_operand.hbm [shape: f32[32,64], index: 7, kind: output, shape index: {}]  }
   0x1   :  { %14 = vsyncpa [#allocation4 + $0x1], 0  ;;  %s951_s24 = smov 0   ;;  %s953_s25 = smov 0  }
   0x2   :  { %s955_s26 = smov 0   ;;  %s957_s27 = smov 0  }
   0x3 LB: > { %s726_s28 = sadd.s32 4294967295, %s906_s27   ;;  %s727_s29 = sadd.s32 4294967294, %s906_s27   ;;  %s906_s27 = sphi %s957_s27, %s1172_s27   ;;  %s902_s26 = sphi %s955_s26, %s1171_s26   ;;  %s898_s25 = sphi %s953_s25, %s1170_s25   ;;  %s894_s24 = sphi %s951_s24, %s1169_s24  }
   0x4   : > { %s974_s30 = sadd.s32 1, %s906_s27   ;;  %s27_s8 = sadd.s32 1, %s902_s26 }
   0x5   : > { %s24_s9 = ssub.s32 %s906_s27, %s974_s30  ;;  %p34_p0 = scmp.ne.s32.totalorder %s902_s26, %s898_s25 }
   0x6   : > { %p25_p1 = scmp.eq.s32.totalorder %s24_s9, 0  ;;  %p35_p2 = scmp.eq.s32.totalorder %s906_s27, 0 }
   0x7   : > { %p190_p3 = scmp.eq.s32.totalorder %s726_s28, 1  ;;  %p195_p4 = scmp.ne.s32.totalorder %s898_s25, %s894_s24 }
   0x8   : > { %s987_s10 = scalar_select %p25_p1, %s902_s26, %s27_s8  }
   0x9   : > { %p36_p5 = por %p35_p2, %p34_p0  ;;  %p989_p6 = por %p190_p3, %p34_p0 }
   0xa   : > { %p196_p7 = scmp.eq.s32.totalorder %s727_s29, 1  ;;  %p729_p9 = scmp.ge.s32.totalorder %s906_s27, 2 }
   0xc   : > { %p993_p8 = por %p196_p7, %p195_p4  ;;  %230 = sbr.rel (%p729_p9) target bundleno = 30 (0x1e), region = 40 }
  0x11   : > { %233 = sbr.rel (!%p36_p5) target bundleno = 30 (0x1e), region = 44  ;;  %s235_s13 = sand.u32 (%p36_p5), 1, %s902_s26  }
  0x12   : > { %s778_s14 = sshll.u32 (%p36_p5), %s906_s27, 4  ;;  %s803_s15 = smul.u32 (%p36_p5), 144, %s235_s13 }
  0x13   : > { %s1005_s18 = scalar_lea.vmem (%p36_p5), %s1159_s0, %s778_s14 }
  0x14   : > { %v303_v0 = vld [vmem:[%s1005_s18] sm:$0xff] (%p36_p5)  ;;  %v305_v1 = vld [vmem:[%s1005_s18 + $0x8] sm:$0xff] (%p36_p5)  ;;  %s237_s19 = scalar_lea.vmem (%p36_p5), [#allocation2], %s803_s15 }
  0x15   : > { %v307_v2 = vld [vmem:[%s1005_s18 + $0x20] sm:$0xff] (%p36_p5)  ;;  %v309_v3 = vld [vmem:[%s1005_s18 + $0x28] sm:$0xff] (%p36_p5)  ;;  %304 = vst [vmem:[%s237_s19] sm:$0xff] (%p36_p5), %v303_v0  ;;  %306 = vst [vmem:[%s237_s19 + $0x8] sm:$0xff] (%p36_p5), %v305_v1 }
  0x16   : > { %v311_v4 = vld [vmem:[%s1005_s18 + $0x40] sm:$0xff]  ;;  %v313_v5 = vld [vmem:[%s1005_s18 + $0x48] sm:$0xff]  ;;  %308 = vst [vmem:[%s237_s19 + $0x10] sm:$0xff] %v307_v2  ;;  %310 = vst [vmem:[%s237_s19 + $0x18] sm:$0xff] %v309_v3 }
  0x17   : > { %312 = vst [vmem:[%s237_s19 + $0x20] sm:$0xff] %v311_v4  ;;  %314 = vst [vmem:[%s237_s19 + $0x28] sm:$0xff] %v313_v5  ;;  %v315_v6 = vld [vmem:[%s1005_s18 + $0x60] sm:$0xff]  ;;  %v317_v7 = vld [vmem:[%s1005_s18 + $0x68] sm:$0xff] }
  0x18   : > { %v319_v8 = vld [vmem:[%s1005_s18 + $0x80] sm:$0xff]  ;;  %316 = vst [vmem:[%s237_s19 + $0x30] sm:$0xff] %v315_v6  ;;  %318 = vst [vmem:[%s237_s19 + $0x38] sm:$0xff] %v317_v7  ;;  %v321_v9 = vld [vmem:[%s1005_s18 + $0x88] sm:$0xff] }
  0x19   : > { %320 = vst [vmem:[%s237_s19 + $0x40] sm:$0xff] %v319_v8  ;;  %v323_v10 = vld [vmem:[%s1005_s18 + $0xa0] sm:$0xff]  ;;  %v325_v11 = vld [vmem:[%s1005_s18 + $0xa8] sm:$0xff]  ;;  %322 = vst [vmem:[%s237_s19 + $0x48] sm:$0xff] %v321_v9 }
  0x1a   : > { %324 = vst [vmem:[%s237_s19 + $0x50] sm:$0xff] %v323_v10  ;;  %326 = vst [vmem:[%s237_s19 + $0x58] sm:$0xff] %v325_v11  ;;  %v327_v12 = vld [vmem:[%s1005_s18 + $0xc0] sm:$0xff]  ;;  %v329_v13 = vld [vmem:[%s1005_s18 + $0xc8] sm:$0xff] }
  0x1b   : > { %v331_v14 = vld [vmem:[%s1005_s18 + $0xe0] sm:$0xff]  ;;  %328 = vst [vmem:[%s237_s19 + $0x60] sm:$0xff] %v327_v12  ;;  %330 = vst [vmem:[%s237_s19 + $0x68] sm:$0xff] %v329_v13  ;;  %v333_v15 = vld [vmem:[%s1005_s18 + $0xe8] sm:$0xff] }
  0x1c   : > { %332 = vst [vmem:[%s237_s19 + $0x70] sm:$0xff] %v331_v14  ;;  %v335_v16 = vld [vmem:[%s1005_s18 + $0x100] sm:$0xff]  ;;  %v337_v17 = vld [vmem:[%s1005_s18 + $0x108] sm:$0xff]  ;;  %334 = vst [vmem:[%s237_s19 + $0x78] sm:$0xff] %v333_v15 }
  0x1d   : > { %336 = vst [vmem:[%s237_s19 + $0x80] sm:$0xff] %v335_v16  ;;  %338 = vst [vmem:[%s237_s19 + $0x88] sm:$0xff] %v337_v17 }
  0x1e PF: > { %p732_p10 = scmp.ge.s32.totalorder %s906_s27, 1  ;;  %p343_p11 = scmp.lt.s32.totalorder %s906_s27, 3 }
  0x20   : > { %p344_p12 = pnand %p732_p10, %p343_p11 }
  0x21   : > { %s1034_s29 = sand.u32 (!%p344_p12), 1, %s898_s25   ;;  %s779_s22 = sshll.u32 (!%p344_p12), %s726_s28, 8 }
  0x22   : > { %347 = sbr.rel (%p344_p12) target bundleno = 283 (0x11b), region = 82  ;;  %s1114_s16 = scalar_lea.hbm (!%p344_p12), %s1166_s7, %s779_s22 }
  0x23   : > { %s804_s8 = smul.u32 (!%p344_p12), 144, %s1034_s29  ;;  %s908_s17 = smov (!%p344_p12), [#allocation3]  }
  0x25   : > { %s1058_s14 = scalar_lea.vmem (!%p344_p12), [#allocation2], %s804_s8  ;;  %s646_s8 = scalar_lea.sflag (!%p344_p12), [#allocation4], %s1034_s29 }
  0x27   : > { %v539_v18 = vld [vmem:[%s1163_s4 + $0x28] sm:$0xff]  ;;  %v538_v19 = vld [vmem:[%s1163_s4 + $0x20] sm:$0xff]  ;;  %v537_v20 = vld [vmem:[%s1163_s4 + $0x18] sm:$0xff]  ;;  %vm540_vm0 = vcmask 392192   ;;  %vm642_vm1 = vcmask 523264  }
  0x28   : > { %788 = vmatprep.subr.mxu0 %v539_v18  ;;  %v734_v21 = vld [vmem:[%s1160_s1] ss:$0 sm:$0xff]  ;;  %v738_v22 = vld [vmem:[%s1160_s1 + $0x1] ss:$0 sm:$0xff]  ;;  %v536_v23 = vld [vmem:[%s1163_s4 + $0x10] sm:$0xff] }
  0x29   : > { %789 = vmatpush3.msra.mxu0 %v539_v18  ;;  %v742_v24 = vld [vmem:[%s1160_s1 + $0x2] ss:$0 sm:$0xff]  ;;  %v746_v25 = vld [vmem:[%s1160_s1 + $0x3] ss:$0 sm:$0xff]  ;;  %v535_v26 = vld [vmem:[%s1163_s4 + $0x8] sm:$0xff] }
  0x2a   : > { %790 = vmatprep.subr.mxu0 %v538_v19  ;;  %v383_v27 = vld [vmem:[%s1058_s14] sm:$0xff]  ;;  %v384_v28 = vld [vmem:[%s1058_s14 + $0x8] sm:$0xff]  ;;  %v735_v29 = vld [vmem:[%s1058_s14 + $0x10] sm:$0xff] }
  0x2b   : > { %791 = vmatpush3.msra.mxu0 %v538_v19  ;;  %v750_v30 = vld [vmem:[%s1160_s1 + $0x4] ss:$0 sm:$0xff]  ;;  %v392_v31 = vmul.f32 %v734_v21, %v383_v27  ;;  %v393_v32 = vmul.f32 %v734_v21, %v384_v28  ;;  %v736_v33 = vld [vmem:[%s1058_s14 + $0x18] sm:$0xff]  ;;  %v405_v34 = vmul.f32 %v738_v22, %v735_v29  ;;  %v740_v36 = vld [vmem:[%s1058_s14 + $0x28] sm:$0xff] }
  0x2c   : > { %792 = vmatprep.subr.mxu0 %v537_v20  ;;  %v739_v35 = vld [vmem:[%s1058_s14 + $0x20] sm:$0xff]  ;;  %v406_v37 = vmul.f32 %v738_v22, %v736_v33  ;;  %v421_v39 = vmul.f32 %v742_v24, %v740_v36  ;;  %v743_v40 = vld [vmem:[%s1058_s14 + $0x30] sm:$0xff]  ;;  %v744_v41 = vld [vmem:[%s1058_s14 + $0x38] sm:$0xff] }
  0x2d   : > { %793 = vmatpush3.msra.mxu0 %v537_v20  ;;  %v420_v38 = vmul.f32 %v742_v24, %v739_v35  ;;  %v747_v42 = vld [vmem:[%s1058_s14 + $0x40] sm:$0xff]  ;;  %v407_v43 = vadd.f32 %v405_v34, %v392_v31  ;;  %v435_v44 = vmul.f32 %v746_v25, %v743_v40  ;;  %v748_v45 = vld [vmem:[%s1058_s14 + $0x48] sm:$0xff]  ;;  %v436_v48 = vmul.f32 %v746_v25, %v744_v41  ;;  %v751_v49 = vld [vmem:[%s1058_s14 + $0x50] sm:$0xff] }
  0x2e   : > { %794 = vmatprep.subr.mxu0 %v536_v23  ;;  %v534_v46 = vld [vmem:[%s1163_s4] sm:$0xff]  ;;  %v408_v47 = vadd.f32 %v406_v37, %v393_v32  ;;  %v450_v52 = vmul.f32 %v750_v30, %v747_v42  ;;  %v752_v53 = vld [vmem:[%s1058_s14 + $0x58] sm:$0xff]  ;;  %v451_v55 = vmul.f32 %v750_v30, %v748_v45  ;;  %v756_v60 = vld [vmem:[%s1058_s14 + $0x68] sm:$0xff] }
  0x2f   : > { %795 = vmatpush3.msra.mxu0 %v536_v23  ;;  %v754_v50 = vld [vmem:[%s1160_s1 + $0x5] ss:$0 sm:$0xff]  ;;  %v422_v51 = vadd.f32 %v420_v38, %v407_v43  ;;  %v758_v57 = vld [vmem:[%s1160_s1 + $0x6] ss:$0 sm:$0xff]  ;;  %v762_v0 = vld [vmem:[%s1160_s1 + $0x7] ss:$0 sm:$0xff] }
  0x30   : > { %796 = vmatprep.subr.mxu0 %v535_v26  ;;  %v423_v54 = vadd.f32 %v421_v39, %v408_v47  ;;  %v755_v56 = vld [vmem:[%s1058_s14 + $0x60] sm:$0xff]  ;;  %v465_v59 = vmul.f32 %v754_v50, %v751_v49  ;;  %v466_v62 = vmul.f32 %v754_v50, %v752_v53  ;;  %v759_v63 = vld [vmem:[%s1058_s14 + $0x70] sm:$0xff]  ;;  %v760_v3 = vld [vmem:[%s1058_s14 + $0x78] sm:$0xff]  ;;  %v481_v5 = vmul.f32 %v758_v57, %v756_v60 }
  0x31   : > { %797 = vmatpush3.msra.mxu0 %v535_v26  ;;  %v437_v58 = vadd.f32 %v435_v44, %v422_v51  ;;  %v480_v2 = vmul.f32 %v758_v57, %v755_v56  ;;  %v763_v6 = vld [vmem:[%s1058_s14 + $0x80] sm:$0xff]  ;;  %v766_v7 = vld [vmem:[%s1160_s1 + $0x8] ss:$0 sm:$0xff]  ;;  %v495_v9 = vmul.f32 %v762_v0, %v759_v63  ;;  %v496_v12 = vmul.f32 %v762_v0, %v760_v3 }
  0x32   : > { %798 = vmatprep.subr.mxu0 %v534_v46  ;;  %v438_v61 = vadd.f32 %v436_v48, %v423_v54  ;;  %v764_v10 = vld [vmem:[%s1058_s14 + $0x88] sm:$0xff]  ;;  %v510_v14 = vmul.f32 %v766_v7, %v763_v6  ;;  %v767_v19 = vld [vmem:[%s1161_s2] ss:$0 sm:$0xff]  ;;  %s733_s14 = sshll.u32 %s1034_s29, 4 }
  0x33   : > { %799 = vmatpush3.msra.mxu0 %v534_v46  ;;  %v452_v1 = vadd.f32 %v450_v52, %v437_v58  ;;  %v511_v16 = vmul.f32 %v766_v7, %v764_v10  ;;  %v768_v22 = vld [vmem:[%s1162_s3] ss:$0 sm:$0xff]  ;;  %s380_s23 = scalar_lea.vmem [#allocation3], %s733_s14  ;;  %s850_s14 = sshll.u32 %s908_s17, 4  ;;  %s851_s14 = int_to_ptr.vmem [resolvable:$false] %s850_s14 }
  0x34   : > { %v453_v4 = vadd.f32 %v451_v55, %v438_v61  ;;  %v771_v29 = vld [vmem:[%s1164_s5] ss:$0 sm:$0xff]  ;;  %s659_s9 = sshll.u32 %s380_s23, 4  ;;  %s852_s18 = scalar_lea.vmem %s851_s14, 512  ;;  %s1116_s9 = int_to_ptr.vmem [resolvable:$true] %s659_s9 }
  0x35   : > { %v467_v8 = vadd.f32 %v465_v59, %v452_v1  ;;  %v772_v31 = vld [vmem:[%s1165_s6] ss:$0 sm:$0xff]  ;;  %s846_s28 = scalar_lea.vmem %s1116_s9, 256  ;;  %p853_p2 = scmp.lt.s32.totalorder %s1116_s9, %s851_s14 }
  0x36   : > { %v468_v11 = vadd.f32 %v466_v62, %v453_v4  ;;  %p847_p13 = scmp.ne.s32.totalorder %s1116_s9, %s846_s28  ;;  %p854_p3 = scmp.lt.s32.totalorder %s852_s18, %s846_s28 }
  0x37   : > { %v482_v13 = vadd.f32 %v480_v2, %v467_v8 }
  0x38   : > { %v483_v15 = vadd.f32 %v481_v5, %v468_v11  ;;  %p848_p0 = pnand %p847_p13, %p989_p6  ;;  %p855_p4 = por %p854_p3, %p853_p2 }
  0x39   : > { %v497_v17 = vadd.f32 %v495_v9, %v482_v13 }
  0x3a   : > { %v498_v18 = vadd.f32 %v496_v12, %v483_v15  ;;  %p849_p1 = pneg %p848_p0 }
  0x3b   : > { %v512_v20 = vadd.f32 %v510_v14, %v497_v17 }
  0x3c   : > { %v513_v21 = vadd.f32 %v511_v16, %v498_v18  ;;  %p856_p5 = pnand %p855_p4, %p849_p1 }
  0x3d   : > { %v521_v23 = vmul.f32 %v767_v19, %v512_v20 }
  0x3e   : > { %v522_v24 = vmul.f32 %v767_v19, %v513_v21 }
  0x3f   : > { %v530_v25 = vadd.f32 %v768_v22, %v521_v23 }
  0x40   : > { %v531_v26 = vadd.f32 %v768_v22, %v522_v24 }
  0x41   : > { %v532_v27 = vmax.f32 %v530_v25, 0.0 }
  0x42   : > { %v533_v28 = vmax.f32 %v531_v26, 0.0 }
  0x43   : > { %800 = vmatprep.mubr.msk.f32.mxu0 %vm540_vm0, %v532_v27 }
  0x44   : > { %801 = vmatmul.mubr.msk.f32.vlgmr.msra.gmra.mxu0 %vm540_vm0, %v533_v28 }
 0x104   : > { %v802_v30 = vpop.f32.mrf.mxu0 }
 0x105   : > { %v630_v32 = vmul.f32 %v802_v30, %v771_v29 }
 0x106   : > { %v613_v33 = vpop.f32.mrf.mxu0 }
 0x107   : > { %v639_v34 = vadd.f32 %v772_v31, %v630_v32  ;;  %v629_v35 = vmul.f32 %v771_v29, %v613_v33 }
 0x109   : > { %v641_v36 = vmax.f32 %v639_v34, 0.0  ;;  %v638_v37 = vadd.f32 %v772_v31, %v629_v35 }
 0x10b   : > { %644 = vst.msk [vmem:[%s380_s23 + $0x8] sm:$0xff] %vm642_vm1, %v641_v36  ;;  %v640_v38 = vmax.f32 %v638_v37, 0.0 }
 0x10d   : > { %643 = vst.msk [vmem:[%s380_s23] sm:$0xff] %vm642_vm1, %v640_v38 }
 0x10e   : > { %859 = shalt.err (!%p856_p5)
}
 0x10f   : > { %s860_s19 = scalar_lea.hbm %s1114_s16, 256  ;;  %s864_s22 = scalar_lea.hbm %s1166_s7, 512 }
 0x110   : > { %p861_p7 = scmp.ne.s32.totalorder %s1114_s16, %s860_s19  ;;  %p865_p12 = scmp.lt.s32.totalorder %s1114_s16, %s1166_s7 }
 0x111   : > { %p866_p13 = scmp.lt.s32.totalorder %s864_s22, %s860_s19 }
 0x112   : > { %p862_p10 = pnand %p861_p7, %p989_p6 }
 0x113   : > { %p867_p0 = por %p866_p13, %p865_p12 }
 0x114   : > { %p863_p11 = pneg %p862_p10 }
 0x116   : > { %p868_p1 = pnand %p867_p0, %p863_p11 }
 0x118   : > { %871 = shalt.err (!%p868_p1)
}
 0x119   : > { %s909_s15 = smov 128   ;;  %s910_s28 = smov 8  }
 0x11a   : > { %805 = dma.vmem_to_hbm [thread:$0]  (%p989_p6), %s1116_s9, 256, %s1114_s16, %s646_s8, %s909_s15, %s909_s15, %s910_s28  }
 0x11b PF: > { %s674_s17 = sand.u32 1, %s894_s24   ;;  %p808_p2 = pnand %p729_p9, %p993_p8 }
 0x11c   : > { %s675_s14 = scalar_lea.sflag [#allocation4], %s674_s17 }
 0x11d   : > { %p809_p3 = pneg %p808_p2 }
 0x11f   : > { %889 = dma.done.wait (%p809_p3), %s675_s14, 256  }
 0x120   : > { %891 = vsyncadd (%p809_p3), %s675_s14, 4294967040  ;;  %p17_p4 = scmp.ge.s32.totalorder %s974_s30, 4   ;;  %s1169_s24 = smov %s898_s25 }
 0x121   : > { %s1170_s25 = smov %s902_s26  ;;  %s1171_s26 = smov %s987_s10 }
 0x122   : > { %s1172_s27 = smov %s974_s30  ;;  %19 = sbr.rel (!%p17_p4) target bundleno = 3 (0x3), region = 142 }
 0x127   :  { %680 = vsyncpa [#allocation4], 1 }
 0x128   :  { %682 = vsyncpa [#allocation4 + $0x1], 1 }

</bundles_post_ra>
